<compile_context>
chip_gen: v7x
topology: tpu7x:2x2x1
jax: 0.10.0
libtpu: 0.0.40
codegen_flags: <defaults>
</compile_context>

<pallas_src>
import functools

import jax
import jax.numpy as jnp
from jax import lax
from jax.experimental import pallas as pl
from jax.experimental.pallas import tpu as pltpu


# ---------------------------------------------------------------------------
# in-kernel helpers (pure jnp/lax, traced inside the Pallas body)
# ---------------------------------------------------------------------------
def _layernorm(h, gamma, beta, eps=1e-5):
    mu = jnp.mean(h, axis=-1, keepdims=True)
    var = jnp.mean((h - mu) ** 2, axis=-1, keepdims=True)
    return (h - mu) * lax.rsqrt(var + eps) * gamma + beta


def _gelu(h):
    # TODO(synk): PyTorch nn.GELU() default is the exact erf-based GELU; Mosaic
    # does not guarantee an erf lowering, so we use the tanh approximation
    # (max abs deviation ~1e-3).
    c = 0.7978845608028654  # sqrt(2/pi)
    return 0.5 * h * (1.0 + jnp.tanh(c * (h + 0.044715 * h * h * h)))


# ---------------------------------------------------------------------------
# kernel: one block of Bb batch elements per grid step (flat 2-D slabs)
# ---------------------------------------------------------------------------
def point_proposer_kernel(scale, Bb, N, J, heads, dim_head,
                          x_ref,
                          w1_ref, b1_ref, g1_ref, be1_ref,
                          w2_ref, b2_ref,
                          jemb_ref, wkv_ref, wout_ref, bout_ref,
                          g2_ref, be2_ref,
                          w3_ref, b3_ref, w4_ref, b4_ref,
                          o_ref):
    inner = heads * dim_head

    # --- pointwise MLP on the whole (Bb*N, cin) slab -------------------------
    x = x_ref[...]                                                    # (Bb*N, cin)
    h = jnp.dot(x, w1_ref[...], preferred_element_type=jnp.float32) + b1_ref[...]
    h = _gelu(_layernorm(h, g1_ref[...], be1_ref[...]))
    h = jnp.dot(h, w2_ref[...], preferred_element_type=jnp.float32) + b2_ref[...]

    # --- MultiHeadJointAttention ---------------------------------------------
    # Fused K/V projection: one matmul (dim -> 2*inner) instead of 2*heads tiny
    # ones; per-head 16-lane slices are taken from the fused result.
    kv = jnp.dot(h, wkv_ref[...], preferred_element_type=jnp.float32)  # (Bb*N, 2*inner)
    kv = kv.reshape(Bb, N, 2 * inner)                                  # last dim intact

    head_outs = []
    for hd in range(heads):                                            # static, tiny
        k_h = kv[:, :, hd * dim_head:(hd + 1) * dim_head]              # (Bb, N, dh)
        v_h = kv[:, :, inner + hd * dim_head: inner + (hd + 1) * dim_head]
        q_h = jnp.broadcast_to(jemb_ref[hd], (Bb, J, dim_head))        # (Bb, J, dh)
        # batched attention over the batch block: one wide softmax, no concat
        dots = jnp.einsum('bjd,bnd->bjn', q_h, k_h,
                          preferred_element_type=jnp.float32) * scale  # (Bb, J, N)
        dots = dots - jnp.max(dots, axis=-1, keepdims=True)
        e = jnp.exp(dots)
        # NOTE: approx reciprocal goes to the (otherwise idle) EUP slot;
        # introduces ~1e-4 rel. error vs an exact divide.
        inv = pl.reciprocal(jnp.sum(e, axis=-1, keepdims=True), approx=True)
        p = e * inv
        head_outs.append(jnp.einsum('bjn,bnd->bjd', p, v_h,
                                    preferred_element_type=jnp.float32))  # (Bb, J, dh)

    # lane-concat the heads ('(h d)' order, matching the PyTorch reshape) and
    # apply to_out once: (Bb*J, inner) @ (inner, dim)
    att_in = head_outs[0] if heads == 1 else jnp.concatenate(head_outs, axis=-1)
    att_in = att_in.reshape(Bb * J, inner)
    att = jnp.dot(att_in, wout_ref[...], preferred_element_type=jnp.float32) + bout_ref[...]

    # --- LayerNorm -> Linear(dim, dim) -> GELU -> Linear(dim, 3+features) ----
    y = _layernorm(att, g2_ref[...], be2_ref[...])
    y = _gelu(jnp.dot(y, w3_ref[...], preferred_element_type=jnp.float32) + b3_ref[...])
    y = jnp.dot(y, w4_ref[...], preferred_element_type=jnp.float32) + b4_ref[...]
    o_ref[...] = y                                                     # (Bb*J, cin)


# ---------------------------------------------------------------------------
# wrapper
# ---------------------------------------------------------------------------
_PARAM_ORDER = ("w1", "b1", "g1", "be1", "w2", "b2",
                "jemb_h", "wkv", "wout", "bout",
                "g2", "be2", "w3", "b3", "w4", "b4")


def _prep_params(params, heads, dim_head):
    """Pre-split the joint queries per head; keep wkv/wout fused for single matmuls."""
    jemb_h = params["jemb"].reshape(-1, heads, dim_head).transpose(1, 0, 2)  # (H, J, dh)
    p = dict(params)
    p["jemb_h"] = jemb_h
    return p


def _dual_tensorcore():
    """True on chips with 2 TensorCores per chip (v7x); False on v5e/v6e."""
    try:
        kind = jax.devices()[0].device_kind.lower()
    except Exception:
        return False
    return "v7" in kind


def point_proposer(x, params, *, heads, dim_head, num_proposal, batch_block=None):
    B, N, cin = x.shape
    J = num_proposal
    scale = float(dim_head) ** -0.5

    if batch_block is None:
        # Single-TC chips (v5e/v6e): never split -> grid=(1,), zero extra
        # per-step overhead.  Dual-TC v7x: split into exactly 2 parallel steps
        # whenever B is even so both TensorCores get half the batch.
        num_blocks = 2 if (_dual_tensorcore() and B % 2 == 0) else 1
        batch_block = B // num_blocks
    assert B % batch_block == 0, "batch_block must divide the batch"
    num_blocks = B // batch_block

    p = _prep_params(params, heads, dim_head)
    weights = [p[k] for k in _PARAM_ORDER]

    def full_spec(a):
        nd = a.ndim
        return pl.BlockSpec(a.shape, lambda b, _nd=nd: (0,) * _nd)

    # Wrapper-side reshapes: kernel sees flat 2-D slabs (no in-kernel reshape
    # of the I/O blocks).  Output last-dim = cin (=7) is tiny; if features ever
    # grows, pad it lane-dense here instead of changing the kernel.
    x_flat = x.reshape(B * N, cin)
    in_specs = [pl.BlockSpec((batch_block * N, cin), lambda b: (b, 0))]
    in_specs += [full_spec(w) for w in weights]
    out_spec = pl.BlockSpec((batch_block * J, cin), lambda b: (b, 0))

    kernel = functools.partial(point_proposer_kernel,
                               scale, batch_block, N, J, heads, dim_head)

    out_flat = pl.pallas_call(
        kernel,
        out_shape=jax.ShapeDtypeStruct((B * J, cin), jnp.float32),
        grid_spec=pltpu.PrefetchScalarGridSpec(
            num_scalar_prefetch=0,
            grid=(num_blocks,),
            in_specs=in_specs,
            out_specs=out_spec,
        ),
        compiler_params=pltpu.CompilerParams(
            dimension_semantics=("parallel",),
            vmem_limit_bytes=32 * 1024 * 1024),
    )(x_flat, *weights)
    return out_flat.reshape(B, J, cin)


# ---------------------------------------------------------------------------
# deterministic parameter construction (shapes follow the PyTorch __init__)
# ---------------------------------------------------------------------------
def make_params(key, dim, heads, dim_head, features, num_proposal):
    cin = 3 + features
    inner = heads * dim_head
    assert dim == inner, "joint_emb reshape requires dim == heads * dim_head"
    ks = jax.random.split(key, 12)

    def rnd(k, shape, s=0.05):
        return jax.random.normal(k, shape, jnp.float32) * s

    return dict(
        # Linear(3+features, dim)  (weight stored transposed: (in, out))
        w1=rnd(ks[0], (cin, dim)), b1=rnd(ks[1], (1, dim)),
        # LayerNorm(dim)
        g1=jnp.ones((1, dim), jnp.float32), be1=jnp.zeros((1, dim), jnp.float32),
        # Linear(dim, dim)
        w2=rnd(ks[2], (dim, dim)), b2=rnd(ks[3], (1, dim)),
        # MultiHeadJointAttention
        jemb=jax.random.normal(ks[4], (num_proposal, dim), jnp.float32),
        wkv=rnd(ks[5], (dim, 2 * inner)),                 # to_kv (no bias)
        wout=rnd(ks[6], (inner, dim)), bout=rnd(ks[7], (1, dim)),  # to_out
        # LayerNorm(dim)
        g2=jnp.ones((1, dim), jnp.float32), be2=jnp.zeros((1, dim), jnp.float32),
        # Linear(dim, dim)
        w3=rnd(ks[8], (dim, dim)), b3=rnd(ks[9], (1, dim)),
        # Linear(dim, 3+features)
        w4=rnd(ks[10], (dim, cin)), b4=rnd(ks[11], (1, cin)),
    )


if __name__ == "__main__":
    key = jax.random.PRNGKey(0)
    B, N = 2, 16                 # batch, number of input points
    features = 4                 # -> Cin = 3 + features = 7
    dim, heads, dim_head = 32, 2, 16
    num_proposal = 8             # number of proposed joints/points

    kx, kp = jax.random.split(key)
    x = jax.random.normal(kx, (B, N, 3 + features), jnp.float32)
    params = make_params(kp, dim, heads, dim_head, features, num_proposal)

    out = point_proposer(x, params, heads=heads, dim_head=dim_head,
                         num_proposal=num_proposal)
    jax.block_until_ready(out)
    assert out.shape == (B, num_proposal, 3 + features)
    assert bool(jnp.all(jnp.isfinite(out)))
    print("KERNEL_OK")
</pallas_src>

<mosaic_0001>
module attributes {stable_mosaic.version = 11 : i64} {
  func.func @point_proposer_kernel(%arg0: i32, %arg1: memref<32x7xf32, #tpu.memory_space<vmem>>, %arg2: memref<7x32xf32, #tpu.memory_space<vmem>>, %arg3: memref<1x32xf32, #tpu.memory_space<vmem>>, %arg4: memref<1x32xf32, #tpu.memory_space<vmem>>, %arg5: memref<1x32xf32, #tpu.memory_space<vmem>>, %arg6: memref<32x32xf32, #tpu.memory_space<vmem>>, %arg7: memref<1x32xf32, #tpu.memory_space<vmem>>, %arg8: memref<2x8x16xf32, #tpu.memory_space<vmem>>, %arg9: memref<32x64xf32, #tpu.memory_space<vmem>>, %arg10: memref<32x32xf32, #tpu.memory_space<vmem>>, %arg11: memref<1x32xf32, #tpu.memory_space<vmem>>, %arg12: memref<1x32xf32, #tpu.memory_space<vmem>>, %arg13: memref<1x32xf32, #tpu.memory_space<vmem>>, %arg14: memref<32x32xf32, #tpu.memory_space<vmem>>, %arg15: memref<1x32xf32, #tpu.memory_space<vmem>>, %arg16: memref<32x7xf32, #tpu.memory_space<vmem>>, %arg17: memref<1x7xf32, #tpu.memory_space<vmem>>, %arg18: memref<16x7xf32, #tpu.memory_space<vmem>>) attributes {dimension_semantics = [#tpu.dimension_semantics<parallel>], iteration_bounds = array<i64: 1>, scalar_prefetch = 0 : i64, scratch_operands = 0 : i64, tpu.core_type = #tpu.core_type<tc>, window_params = [{transform_indices = @transform_0, window_bounds = array<i64: 32, 7>}, {pipeline_mode = #tpu.pipeline_mode<synchronous>, transform_indices = @transform_1, window_bounds = array<i64: 7, 32>}, {pipeline_mode = #tpu.pipeline_mode<synchronous>, transform_indices = @transform_2, window_bounds = array<i64: 1, 32>}, {pipeline_mode = #tpu.pipeline_mode<synchronous>, transform_indices = @transform_3, window_bounds = array<i64: 1, 32>}, {pipeline_mode = #tpu.pipeline_mode<synchronous>, transform_indices = @transform_4, window_bounds = array<i64: 1, 32>}, {pipeline_mode = #tpu.pipeline_mode<synchronous>, transform_indices = @transform_5, window_bounds = array<i64: 32, 32>}, {pipeline_mode = #tpu.pipeline_mode<synchronous>, transform_indices = @transform_6, window_bounds = array<i64: 1, 32>}, {pipeline_mode = #tpu.pipeline_mode<synchronous>, transform_indices = @transform_7, window_bounds = array<i64: 2, 8, 16>}, {pipeline_mode = #tpu.pipeline_mode<synchronous>, transform_indices = @transform_8, window_bounds = array<i64: 32, 64>}, {pipeline_mode = #tpu.pipeline_mode<synchronous>, transform_indices = @transform_9, window_bounds = array<i64: 32, 32>}, {pipeline_mode = #tpu.pipeline_mode<synchronous>, transform_indices = @transform_10, window_bounds = array<i64: 1, 32>}, {pipeline_mode = #tpu.pipeline_mode<synchronous>, transform_indices = @transform_11, window_bounds = array<i64: 1, 32>}, {pipeline_mode = #tpu.pipeline_mode<synchronous>, transform_indices = @transform_12, window_bounds = array<i64: 1, 32>}, {pipeline_mode = #tpu.pipeline_mode<synchronous>, transform_indices = @transform_13, window_bounds = array<i64: 32, 32>}, {pipeline_mode = #tpu.pipeline_mode<synchronous>, transform_indices = @transform_14, window_bounds = array<i64: 1, 32>}, {pipeline_mode = #tpu.pipeline_mode<synchronous>, transform_indices = @transform_15, window_bounds = array<i64: 32, 7>}, {pipeline_mode = #tpu.pipeline_mode<synchronous>, transform_indices = @transform_16, window_bounds = array<i64: 1, 7>}, {transform_indices = @transform_17, window_bounds = array<i64: 16, 7>}]} {
    %c0 = arith.constant 0 : index
    %c0_0 = arith.constant 0 : index
    %0 = vector.load %arg1[%c0, %c0_0] : memref<32x7xf32, #tpu.memory_space<vmem>>, vector<32x7xf32>
    %c0_1 = arith.constant 0 : index
    %c0_2 = arith.constant 0 : index
    %1 = vector.load %arg2[%c0_1, %c0_2] : memref<7x32xf32, #tpu.memory_space<vmem>>, vector<7x32xf32>
    %cst = arith.constant dense<0.000000e+00> : vector<32x32xf32>
    %2 = tpu.matmul %0, %1, %cst {dimension_numbers = #tpu.dot_dimension_numbers<[1], [0], [0], [1], [0, 0, 1, 1], [], []>} : vector<32x7xf32>, vector<7x32xf32>, vector<32x32xf32> -> vector<32x32xf32>
    %c0_3 = arith.constant 0 : index
    %c0_4 = arith.constant 0 : index
    %3 = vector.load %arg3[%c0_3, %c0_4] : memref<1x32xf32, #tpu.memory_space<vmem>>, vector<1x32xf32>
    %4 = vector.broadcast %3 : vector<1x32xf32> to vector<32x32xf32>
    %5 = arith.addf %2, %4 : vector<32x32xf32>
    %c0_5 = arith.constant 0 : index
    %c0_6 = arith.constant 0 : index
    %6 = vector.load %arg4[%c0_5, %c0_6] : memref<1x32xf32, #tpu.memory_space<vmem>>, vector<1x32xf32>
    %c0_7 = arith.constant 0 : index
    %c0_8 = arith.constant 0 : index
    %7 = vector.load %arg5[%c0_7, %c0_8] : memref<1x32xf32, #tpu.memory_space<vmem>>, vector<1x32xf32>
    %cst_9 = arith.constant dense<0.000000e+00> : vector<32xf32>
    %8 = vector.multi_reduction <add>, %5, %cst_9 [1] : vector<32x32xf32> to vector<32xf32>
    %9 = vector.shape_cast %8 : vector<32xf32> to vector<32x1xf32>
    %cst_10 = arith.constant 3.200000e+01 : f32
    %10 = vector.broadcast %cst_10 : f32 to vector<32x1xf32>
    %11 = arith.divf %9, %10 : vector<32x1xf32>
    %12 = vector.broadcast %11 : vector<32x1xf32> to vector<32x32xf32>
    %13 = arith.subf %5, %12 : vector<32x32xf32>
    %14 = arith.mulf %13, %13 : vector<32x32xf32>
    %cst_11 = arith.constant dense<0.000000e+00> : vector<32xf32>
    %15 = vector.multi_reduction <add>, %14, %cst_11 [1] : vector<32x32xf32> to vector<32xf32>
    %16 = vector.shape_cast %15 : vector<32xf32> to vector<32x1xf32>
    %cst_12 = arith.constant 3.200000e+01 : f32
    %17 = vector.broadcast %cst_12 : f32 to vector<32x1xf32>
    %18 = arith.divf %16, %17 : vector<32x1xf32>
    %19 = vector.broadcast %11 : vector<32x1xf32> to vector<32x32xf32>
    %20 = arith.subf %5, %19 : vector<32x32xf32>
    %cst_13 = arith.constant 9.99999974E-6 : f32
    %21 = vector.broadcast %cst_13 : f32 to vector<32x1xf32>
    %22 = arith.addf %18, %21 : vector<32x1xf32>
    %23 = math.rsqrt %22 : vector<32x1xf32>
    %24 = vector.broadcast %23 : vector<32x1xf32> to vector<32x32xf32>
    %25 = arith.mulf %20, %24 : vector<32x32xf32>
    %26 = vector.broadcast %6 : vector<1x32xf32> to vector<32x32xf32>
    %27 = arith.mulf %25, %26 : vector<32x32xf32>
    %28 = vector.broadcast %7 : vector<1x32xf32> to vector<32x32xf32>
    %29 = arith.addf %27, %28 : vector<32x32xf32>
    %cst_14 = arith.constant 5.000000e-01 : f32
    %30 = vector.broadcast %cst_14 : f32 to vector<32x32xf32>
    %31 = arith.mulf %30, %29 : vector<32x32xf32>
    %cst_15 = arith.constant 4.471500e-02 : f32
    %32 = vector.broadcast %cst_15 : f32 to vector<32x32xf32>
    %33 = arith.mulf %32, %29 : vector<32x32xf32>
    %34 = arith.mulf %33, %29 : vector<32x32xf32>
    %35 = arith.mulf %34, %29 : vector<32x32xf32>
    %36 = arith.addf %29, %35 : vector<32x32xf32>
    %cst_16 = arith.constant 0.797884583 : f32
    %37 = vector.broadcast %cst_16 : f32 to vector<32x32xf32>
    %38 = arith.mulf %37, %36 : vector<32x32xf32>
    %39 = math.tanh %38 : vector<32x32xf32>
    %cst_17 = arith.constant 1.000000e+00 : f32
    %40 = vector.broadcast %cst_17 : f32 to vector<32x32xf32>
    %41 = arith.addf %40, %39 : vector<32x32xf32>
    %42 = arith.mulf %31, %41 : vector<32x32xf32>
    %c0_18 = arith.constant 0 : index
    %c0_19 = arith.constant 0 : index
    %43 = vector.load %arg6[%c0_18, %c0_19] : memref<32x32xf32, #tpu.memory_space<vmem>>, vector<32x32xf32>
    %cst_20 = arith.constant dense<0.000000e+00> : vector<32x32xf32>
    %44 = tpu.matmul %42, %43, %cst_20 {dimension_numbers = #tpu.dot_dimension_numbers<[1], [0], [0], [1], [0, 0, 1, 1], [], []>} : vector<32x32xf32>, vector<32x32xf32>, vector<32x32xf32> -> vector<32x32xf32>
    %c0_21 = arith.constant 0 : index
    %c0_22 = arith.constant 0 : index
    %45 = vector.load %arg7[%c0_21, %c0_22] : memref<1x32xf32, #tpu.memory_space<vmem>>, vector<1x32xf32>
    %46 = vector.broadcast %45 : vector<1x32xf32> to vector<32x32xf32>
    %47 = arith.addf %44, %46 : vector<32x32xf32>
    %c0_23 = arith.constant 0 : index
    %c0_24 = arith.constant 0 : index
    %48 = vector.load %arg9[%c0_23, %c0_24] : memref<32x64xf32, #tpu.memory_space<vmem>>, vector<32x64xf32>
    %cst_25 = arith.constant dense<0.000000e+00> : vector<32x64xf32>
    %49 = tpu.matmul %47, %48, %cst_25 {dimension_numbers = #tpu.dot_dimension_numbers<[1], [0], [0], [1], [0, 0, 1, 1], [], []>} : vector<32x32xf32>, vector<32x64xf32>, vector<32x64xf32> -> vector<32x64xf32>
    %50 = vector.shape_cast %49 : vector<32x64xf32> to vector<2x16x64xf32>
    %51 = vector.extract_strided_slice %50 {offsets = [0, 0, 0], sizes = [2, 16, 16], strides = [1, 1, 1]} : vector<2x16x64xf32> to vector<2x16x16xf32>
    %52 = vector.extract_strided_slice %50 {offsets = [0, 0, 32], sizes = [2, 16, 16], strides = [1, 1, 1]} : vector<2x16x64xf32> to vector<2x16x16xf32>
    %c0_26 = arith.constant 0 : index
    %c0_27 = arith.constant 0 : index
    %c0_28 = arith.constant 0 : index
    %53 = vector.load %arg8[%c0_26, %c0_27, %c0_28] : memref<2x8x16xf32, #tpu.memory_space<vmem>>, vector<1x8x16xf32>
    %54 = vector.shape_cast %53 : vector<1x8x16xf32> to vector<8x16xf32>
    %55 = vector.shape_cast %54 : vector<8x16xf32> to vector<1x8x16xf32>
    %56 = vector.broadcast %55 : vector<1x8x16xf32> to vector<2x8x16xf32>
    "tpu.trace_start"() <{level = 10 : i32, message = "bjd,bnd->bjn"}> : () -> ()
    %cst_29 = arith.constant dense<0.000000e+00> : vector<2x8x16xf32>
    %57 = tpu.matmul %56, %51, %cst_29 {dimension_numbers = #tpu.dot_dimension_numbers<[2], [2], [1], [1], [0, 0, 0, 1, 1, 1], [0], [0]>} : vector<2x8x16xf32>, vector<2x16x16xf32>, vector<2x8x16xf32> -> vector<2x8x16xf32>
    "tpu.trace_stop"() : () -> ()
    %cst_30 = arith.constant 2.500000e-01 : f32
    %58 = vector.broadcast %cst_30 : f32 to vector<2x8x16xf32>
    %59 = arith.mulf %57, %58 : vector<2x8x16xf32>
    %cst_31 = arith.constant dense<0xFF800000> : vector<2x8xf32>
    %60 = vector.multi_reduction <maximumf>, %59, %cst_31 [2] : vector<2x8x16xf32> to vector<2x8xf32>
    %61 = vector.shape_cast %60 : vector<2x8xf32> to vector<2x8x1xf32>
    %62 = vector.broadcast %61 : vector<2x8x1xf32> to vector<2x8x16xf32>
    %63 = arith.subf %59, %62 : vector<2x8x16xf32>
    %64 = math.exp %63 : vector<2x8x16xf32>
    %cst_32 = arith.constant dense<0.000000e+00> : vector<2x8xf32>
    %65 = vector.multi_reduction <add>, %64, %cst_32 [2] : vector<2x8x16xf32> to vector<2x8xf32>
    %66 = vector.shape_cast %65 : vector<2x8xf32> to vector<2x8x1xf32>
    %67 = tpu.reciprocal %66 {approx = true} : vector<2x8x1xf32> -> vector<2x8x1xf32>
    %68 = vector.broadcast %67 : vector<2x8x1xf32> to vector<2x8x16xf32>
    %69 = arith.mulf %64, %68 : vector<2x8x16xf32>
    "tpu.trace_start"() <{level = 10 : i32, message = "bjn,bnd->bjd"}> : () -> ()
    %cst_33 = arith.constant dense<0.000000e+00> : vector<2x8x16xf32>
    %70 = tpu.matmul %69, %52, %cst_33 {dimension_numbers = #tpu.dot_dimension_numbers<[2], [1], [1], [2], [0, 0, 0, 1, 1, 2], [0], [0]>} : vector<2x8x16xf32>, vector<2x16x16xf32>, vector<2x8x16xf32> -> vector<2x8x16xf32>
    "tpu.trace_stop"() : () -> ()
    %71 = vector.extract_strided_slice %50 {offsets = [0, 0, 16], sizes = [2, 16, 16], strides = [1, 1, 1]} : vector<2x16x64xf32> to vector<2x16x16xf32>
    %72 = vector.extract_strided_slice %50 {offsets = [0, 0, 48], sizes = [2, 16, 16], strides = [1, 1, 1]} : vector<2x16x64xf32> to vector<2x16x16xf32>
    %c1 = arith.constant 1 : index
    %c0_34 = arith.constant 0 : index
    %c0_35 = arith.constant 0 : index
    %73 = vector.load %arg8[%c1, %c0_34, %c0_35] : memref<2x8x16xf32, #tpu.memory_space<vmem>>, vector<1x8x16xf32>
    %74 = vector.shape_cast %73 : vector<1x8x16xf32> to vector<8x16xf32>
    %75 = vector.shape_cast %74 : vector<8x16xf32> to vector<1x8x16xf32>
    %76 = vector.broadcast %75 : vector<1x8x16xf32> to vector<2x8x16xf32>
    "tpu.trace_start"() <{level = 10 : i32, message = "bjd,bnd->bjn"}> : () -> ()
    %cst_36 = arith.constant dense<0.000000e+00> : vector<2x8x16xf32>
    %77 = tpu.matmul %76, %71, %cst_36 {dimension_numbers = #tpu.dot_dimension_numbers<[2], [2], [1], [1], [0, 0, 0, 1, 1, 1], [0], [0]>} : vector<2x8x16xf32>, vector<2x16x16xf32>, vector<2x8x16xf32> -> vector<2x8x16xf32>
    "tpu.trace_stop"() : () -> ()
    %cst_37 = arith.constant 2.500000e-01 : f32
    %78 = vector.broadcast %cst_37 : f32 to vector<2x8x16xf32>
    %79 = arith.mulf %77, %78 : vector<2x8x16xf32>
    %cst_38 = arith.constant dense<0xFF800000> : vector<2x8xf32>
    %80 = vector.multi_reduction <maximumf>, %79, %cst_38 [2] : vector<2x8x16xf32> to vector<2x8xf32>
    %81 = vector.shape_cast %80 : vector<2x8xf32> to vector<2x8x1xf32>
    %82 = vector.broadcast %81 : vector<2x8x1xf32> to vector<2x8x16xf32>
    %83 = arith.subf %79, %82 : vector<2x8x16xf32>
    %84 = math.exp %83 : vector<2x8x16xf32>
    %cst_39 = arith.constant dense<0.000000e+00> : vector<2x8xf32>
    %85 = vector.multi_reduction <add>, %84, %cst_39 [2] : vector<2x8x16xf32> to vector<2x8xf32>
    %86 = vector.shape_cast %85 : vector<2x8xf32> to vector<2x8x1xf32>
    %87 = tpu.reciprocal %86 {approx = true} : vector<2x8x1xf32> -> vector<2x8x1xf32>
    %88 = vector.broadcast %87 : vector<2x8x1xf32> to vector<2x8x16xf32>
    %89 = arith.mulf %84, %88 : vector<2x8x16xf32>
    "tpu.trace_start"() <{level = 10 : i32, message = "bjn,bnd->bjd"}> : () -> ()
    %cst_40 = arith.constant dense<0.000000e+00> : vector<2x8x16xf32>
    %90 = tpu.matmul %89, %72, %cst_40 {dimension_numbers = #tpu.dot_dimension_numbers<[2], [1], [1], [2], [0, 0, 0, 1, 1, 2], [0], [0]>} : vector<2x8x16xf32>, vector<2x16x16xf32>, vector<2x8x16xf32> -> vector<2x8x16xf32>
    "tpu.trace_stop"() : () -> ()
    %91 = tpu.concatenate %70, %90 in 2 : vector<2x8x16xf32>, vector<2x8x16xf32> -> vector<2x8x32xf32>
    %92 = vector.shape_cast %91 : vector<2x8x32xf32> to vector<16x32xf32>
    %c0_41 = arith.constant 0 : index
    %c0_42 = arith.constant 0 : index
    %93 = vector.load %arg10[%c0_41, %c0_42] : memref<32x32xf32, #tpu.memory_space<vmem>>, vector<32x32xf32>
    %cst_43 = arith.constant dense<0.000000e+00> : vector<16x32xf32>
    %94 = tpu.matmul %92, %93, %cst_43 {dimension_numbers = #tpu.dot_dimension_numbers<[1], [0], [0], [1], [0, 0, 1, 1], [], []>} : vector<16x32xf32>, vector<32x32xf32>, vector<16x32xf32> -> vector<16x32xf32>
    %c0_44 = arith.constant 0 : index
    %c0_45 = arith.constant 0 : index
    %95 = vector.load %arg11[%c0_44, %c0_45] : memref<1x32xf32, #tpu.memory_space<vmem>>, vector<1x32xf32>
    %96 = vector.broadcast %95 : vector<1x32xf32> to vector<16x32xf32>
    %97 = arith.addf %94, %96 : vector<16x32xf32>
    %c0_46 = arith.constant 0 : index
    %c0_47 = arith.constant 0 : index
    %98 = vector.load %arg12[%c0_46, %c0_47] : memref<1x32xf32, #tpu.memory_space<vmem>>, vector<1x32xf32>
    %c0_48 = arith.constant 0 : index
    %c0_49 = arith.constant 0 : index
    %99 = vector.load %arg13[%c0_48, %c0_49] : memref<1x32xf32, #tpu.memory_space<vmem>>, vector<1x32xf32>
    %cst_50 = arith.constant dense<0.000000e+00> : vector<16xf32>
    %100 = vector.multi_reduction <add>, %97, %cst_50 [1] : vector<16x32xf32> to vector<16xf32>
    %101 = vector.shape_cast %100 : vector<16xf32> to vector<16x1xf32>
    %cst_51 = arith.constant 3.200000e+01 : f32
    %102 = vector.broadcast %cst_51 : f32 to vector<16x1xf32>
    %103 = arith.divf %101, %102 : vector<16x1xf32>
    %104 = vector.broadcast %103 : vector<16x1xf32> to vector<16x32xf32>
    %105 = arith.subf %97, %104 : vector<16x32xf32>
    %106 = arith.mulf %105, %105 : vector<16x32xf32>
    %cst_52 = arith.constant dense<0.000000e+00> : vector<16xf32>
    %107 = vector.multi_reduction <add>, %106, %cst_52 [1] : vector<16x32xf32> to vector<16xf32>
    %108 = vector.shape_cast %107 : vector<16xf32> to vector<16x1xf32>
    %cst_53 = arith.constant 3.200000e+01 : f32
    %109 = vector.broadcast %cst_53 : f32 to vector<16x1xf32>
    %110 = arith.divf %108, %109 : vector<16x1xf32>
    %111 = vector.broadcast %103 : vector<16x1xf32> to vector<16x32xf32>
    %112 = arith.subf %97, %111 : vector<16x32xf32>
    %cst_54 = arith.constant 9.99999974E-6 : f32
    %113 = vector.broadcast %cst_54 : f32 to vector<16x1xf32>
    %114 = arith.addf %110, %113 : vector<16x1xf32>
    %115 = math.rsqrt %114 : vector<16x1xf32>
    %116 = vector.broadcast %115 : vector<16x1xf32> to vector<16x32xf32>
    %117 = arith.mulf %112, %116 : vector<16x32xf32>
    %118 = vector.broadcast %98 : vector<1x32xf32> to vector<16x32xf32>
    %119 = arith.mulf %117, %118 : vector<16x32xf32>
    %120 = vector.broadcast %99 : vector<1x32xf32> to vector<16x32xf32>
    %121 = arith.addf %119, %120 : vector<16x32xf32>
    %c0_55 = arith.constant 0 : index
    %c0_56 = arith.constant 0 : index
    %122 = vector.load %arg14[%c0_55, %c0_56] : memref<32x32xf32, #tpu.memory_space<vmem>>, vector<32x32xf32>
    %cst_57 = arith.constant dense<0.000000e+00> : vector<16x32xf32>
    %123 = tpu.matmul %121, %122, %cst_57 {dimension_numbers = #tpu.dot_dimension_numbers<[1], [0], [0], [1], [0, 0, 1, 1], [], []>} : vector<16x32xf32>, vector<32x32xf32>, vector<16x32xf32> -> vector<16x32xf32>
    %c0_58 = arith.constant 0 : index
    %c0_59 = arith.constant 0 : index
    %124 = vector.load %arg15[%c0_58, %c0_59] : memref<1x32xf32, #tpu.memory_space<vmem>>, vector<1x32xf32>
    %125 = vector.broadcast %124 : vector<1x32xf32> to vector<16x32xf32>
    %126 = arith.addf %123, %125 : vector<16x32xf32>
    %cst_60 = arith.constant 5.000000e-01 : f32
    %127 = vector.broadcast %cst_60 : f32 to vector<16x32xf32>
    %128 = arith.mulf %127, %126 : vector<16x32xf32>
    %cst_61 = arith.constant 4.471500e-02 : f32
    %129 = vector.broadcast %cst_61 : f32 to vector<16x32xf32>
    %130 = arith.mulf %129, %126 : vector<16x32xf32>
    %131 = arith.mulf %130, %126 : vector<16x32xf32>
    %132 = arith.mulf %131, %126 : vector<16x32xf32>
    %133 = arith.addf %126, %132 : vector<16x32xf32>
    %cst_62 = arith.constant 0.797884583 : f32
    %134 = vector.broadcast %cst_62 : f32 to vector<16x32xf32>
    %135 = arith.mulf %134, %133 : vector<16x32xf32>
    %136 = math.tanh %135 : vector<16x32xf32>
    %cst_63 = arith.constant 1.000000e+00 : f32
    %137 = vector.broadcast %cst_63 : f32 to vector<16x32xf32>
    %138 = arith.addf %137, %136 : vector<16x32xf32>
    %139 = arith.mulf %128, %138 : vector<16x32xf32>
    %c0_64 = arith.constant 0 : index
    %c0_65 = arith.constant 0 : index
    %140 = vector.load %arg16[%c0_64, %c0_65] : memref<32x7xf32, #tpu.memory_space<vmem>>, vector<32x7xf32>
    %cst_66 = arith.constant dense<0.000000e+00> : vector<16x7xf32>
    %141 = tpu.matmul %139, %140, %cst_66 {dimension_numbers = #tpu.dot_dimension_numbers<[1], [0], [0], [1], [0, 0, 1, 1], [], []>} : vector<16x32xf32>, vector<32x7xf32>, vector<16x7xf32> -> vector<16x7xf32>
    %c0_67 = arith.constant 0 : index
    %c0_68 = arith.constant 0 : index
    %142 = vector.load %arg17[%c0_67, %c0_68] : memref<1x7xf32, #tpu.memory_space<vmem>>, vector<1x7xf32>
    %143 = vector.broadcast %142 : vector<1x7xf32> to vector<16x7xf32>
    %144 = arith.addf %141, %143 : vector<16x7xf32>
    %c0_69 = arith.constant 0 : index
    %c0_70 = arith.constant 0 : index
    %145 = vector.load %arg18[%c0_69, %c0_70] : memref<16x7xf32, #tpu.memory_space<vmem>>, vector<16x7xf32>
    tpu.vector_store %arg18[%c0_69, %c0_70], %144 {strides = array<i32>} : memref<16x7xf32, #tpu.memory_space<vmem>>, vector<16x7xf32>,
    return
  }
  func.func @transform_0(%arg0: i32) -> (i32, i32) {
    %c0_i32 = arith.constant 0 : i32
    %c0_i32_0 = arith.constant 0 : i32
    return %arg0, %c0_i32 : i32, i32
  }
  func.func @transform_1(%arg0: i32) -> (i32, i32) {
    %c0_i32 = arith.constant 0 : i32
    %c0_i32_0 = arith.constant 0 : i32
    %c0_i32_1 = arith.constant 0 : i32
    return %c0_i32, %c0_i32_0 : i32, i32
  }
  func.func @transform_2(%arg0: i32) -> (i32, i32) {
    %c0_i32 = arith.constant 0 : i32
    %c0_i32_0 = arith.constant 0 : i32
    %c0_i32_1 = arith.constant 0 : i32
    return %c0_i32, %c0_i32_0 : i32, i32
  }
  func.func @transform_3(%arg0: i32) -> (i32, i32) {
    %c0_i32 = arith.constant 0 : i32
    %c0_i32_0 = arith.constant 0 : i32
    %c0_i32_1 = arith.constant 0 : i32
    return %c0_i32, %c0_i32_0 : i32, i32
  }
  func.func @transform_4(%arg0: i32) -> (i32, i32) {
    %c0_i32 = arith.constant 0 : i32
    %c0_i32_0 = arith.constant 0 : i32
    %c0_i32_1 = arith.constant 0 : i32
    return %c0_i32, %c0_i32_0 : i32, i32
  }
  func.func @transform_5(%arg0: i32) -> (i32, i32) {
    %c0_i32 = arith.constant 0 : i32
    %c0_i32_0 = arith.constant 0 : i32
    %c0_i32_1 = arith.constant 0 : i32
    return %c0_i32, %c0_i32_0 : i32, i32
  }
  func.func @transform_6(%arg0: i32) -> (i32, i32) {
    %c0_i32 = arith.constant 0 : i32
    %c0_i32_0 = arith.constant 0 : i32
    %c0_i32_1 = arith.constant 0 : i32
    return %c0_i32, %c0_i32_0 : i32, i32
  }
  func.func @transform_7(%arg0: i32) -> (i32, i32, i32) {
    %c0_i32 = arith.constant 0 : i32
    %c0_i32_0 = arith.constant 0 : i32
    %c0_i32_1 = arith.constant 0 : i32
    %c0_i32_2 = arith.constant 0 : i32
    return %c0_i32, %c0_i32_0, %c0_i32_1 : i32, i32, i32
  }
  func.func @transform_8(%arg0: i32) -> (i32, i32) {
    %c0_i32 = arith.constant 0 : i32
    %c0_i32_0 = arith.constant 0 : i32
    %c0_i32_1 = arith.constant 0 : i32
    return %c0_i32, %c0_i32_0 : i32, i32
  }
  func.func @transform_9(%arg0: i32) -> (i32, i32) {
    %c0_i32 = arith.constant 0 : i32
    %c0_i32_0 = arith.constant 0 : i32
    %c0_i32_1 = arith.constant 0 : i32
    return %c0_i32, %c0_i32_0 : i32, i32
  }
  func.func @transform_10(%arg0: i32) -> (i32, i32) {
    %c0_i32 = arith.constant 0 : i32
    %c0_i32_0 = arith.constant 0 : i32
    %c0_i32_1 = arith.constant 0 : i32
    return %c0_i32, %c0_i32_0 : i32, i32
  }
  func.func @transform_11(%arg0: i32) -> (i32, i32) {
    %c0_i32 = arith.constant 0 : i32
    %c0_i32_0 = arith.constant 0 : i32
    %c0_i32_1 = arith.constant 0 : i32
    return %c0_i32, %c0_i32_0 : i32, i32
  }
  func.func @transform_12(%arg0: i32) -> (i32, i32) {
    %c0_i32 = arith.constant 0 : i32
    %c0_i32_0 = arith.constant 0 : i32
    %c0_i32_1 = arith.constant 0 : i32
    return %c0_i32, %c0_i32_0 : i32, i32
  }
  func.func @transform_13(%arg0: i32) -> (i32, i32) {
    %c0_i32 = arith.constant 0 : i32
    %c0_i32_0 = arith.constant 0 : i32
    %c0_i32_1 = arith.constant 0 : i32
    return %c0_i32, %c0_i32_0 : i32, i32
  }
  func.func @transform_14(%arg0: i32) -> (i32, i32) {
    %c0_i32 = arith.constant 0 : i32
    %c0_i32_0 = arith.constant 0 : i32
    %c0_i32_1 = arith.constant 0 : i32
    return %c0_i32, %c0_i32_0 : i32, i32
  }
  func.func @transform_15(%arg0: i32) -> (i32, i32) {
    %c0_i32 = arith.constant 0 : i32
    %c0_i32_0 = arith.constant 0 : i32
    %c0_i32_1 = arith.constant 0 : i32
    return %c0_i32, %c0_i32_0 : i32, i32
  }
  func.func @transform_16(%arg0: i32) -> (i32, i32) {
    %c0_i32 = arith.constant 0 : i32
    %c0_i32_0 = arith.constant 0 : i32
    %c0_i32_1 = arith.constant 0 : i32
    return %c0_i32, %c0_i32_0 : i32, i32
  }
  func.func @transform_17(%arg0: i32) -> (i32, i32) {
    %c0_i32 = arith.constant 0 : i32
    %c0_i32_0 = arith.constant 0 : i32
    return %arg0, %c0_i32 : i32, i32
  }
}

</mosaic_0001>

<bundles_post_ra>
// kernel: tpu_custom_call.1
= control target key start
LH: loop header
LB: loop body
LE: loop exit
PB: predicated region body
PF: predicated region fallthrough
CT: control target
= control target key end

     0   :  { %s2680_s0 = inlined_call_operand.vmem [shape: f32[32,7], index: 0, kind: input, shape index: {}]   ;;  %s2681_s1 = inlined_call_operand.hbm [shape: f32[7,32], index: 1, kind: input, shape index: {}]   ;;  %s2682_s2 = inlined_call_operand.hbm [shape: f32[1,32], index: 2, kind: input, shape index: {}]   ;;  %s2683_s3 = inlined_call_operand.hbm [shape: f32[1,32], index: 3, kind: input, shape index: {}]   ;;  %s2684_s4 = inlined_call_operand.hbm [shape: f32[1,32], index: 4, kind: input, shape index: {}]   ;;  %s2685_s5 = inlined_call_operand.vmem [shape: f32[32,32], index: 5, kind: input, shape index: {}]   ;;  %s2686_s6 = inlined_call_operand.hbm [shape: f32[1,32], index: 6, kind: input, shape index: {}]   ;;  %s2687_s7 = inlined_call_operand.hbm [shape: f32[2,8,16], index: 7, kind: input, shape index: {}]   ;;  %s2688_s8 = inlined_call_operand.vmem [shape: f32[32,64], index: 8, kind: input, shape index: {}]   ;;  %s2689_s9 = inlined_call_operand.vmem [shape: f32[32,32], index: 9, kind: input, shape index: {}]   ;;  %s2690_s10 = inlined_call_operand.hbm [shape: f32[1,32], index: 10, kind: input, shape index: {}]   ;;  %s2691_s11 = inlined_call_operand.hbm [shape: f32[1,32], index: 11, kind: input, shape index: {}]   ;;  %s2692_s12 = inlined_call_operand.hbm [shape: f32[1,32], index: 12, kind: input, shape index: {}]   ;;  %s2693_s13 = inlined_call_operand.vmem [shape: f32[32,32], index: 13, kind: input, shape index: {}]   ;;  %s2694_s14 = inlined_call_operand.hbm [shape: f32[1,32], index: 14, kind: input, shape index: {}]   ;;  %s2695_s15 = inlined_call_operand.vmem [shape: f32[32,7], index: 15, kind: input, shape index: {}]   ;;  %s2696_s16 = inlined_call_operand.vmem [shape: f32[1,7], index: 16, kind: input, shape index: {}]   ;;  %s2697_s17 = inlined_call_operand.vmem [shape: f32[16,7], index: 17, kind: output, shape index: {}]  }
   0x1   :  { %2700 = sst [smem:[#allocation24_spill]] %s2680_s0 }
   0x2   :  { %2701 = sst [smem:[#allocation25_spill]] %s2681_s1 }
   0x3   :  { %22 = vsyncpa [#allocation3], 0 }
   0x4   :  { %23 = vsyncpa [#allocation5], 0 }
   0x5   :  { %24 = vsyncpa [#allocation8], 0 }
   0x6   :  { %25 = vsyncpa [#allocation11], 0 }
   0x7   :  { %26 = vsyncpa [#allocation14], 0 }
   0x8   :  { %27 = vsyncpa [#allocation17], 0  ;;  %s2272_s24 = smov [#allocation4]   ;;  %s2273_s26 = smov [#allocation7]  }
   0x9   :  { %s46_s25 = sshll.u32 %s2272_s24, 4  ;;  %s66_s27 = sshll.u32 %s2273_s26, 4  ;;  %s47_s25 = int_to_ptr.vmem [resolvable:$true] %s46_s25  ;;  %s67_s27 = int_to_ptr.vmem [resolvable:$true] %s66_s27 }
   0xa   :  { %s2040_s0 = scalar_lea.hbm %s2682_s2, 16 }
   0xb   :  { %p2041_p0 = scmp.ne.s32.totalorder %s2682_s2, %s2040_s0  ;;  %p2044_p1 = scmp.lt.u32.totalorder %s2040_s0, %s2682_s2 }
   0xd   :  { %p2046_p2 = pnand %p2044_p1, %p2041_p0 }
   0xf   :  { %2049 = shalt.err (!%p2046_p2)
}
  0x10   :  { %s2050_s20 = scalar_lea.vmem %s47_s25, 16  ;;  %s2054_s21 = scalar_lea.vmem %s47_s25, 32 }
  0x11   :  { %p2051_p3 = scmp.ne.s32.totalorder %s47_s25, %s2050_s20  ;;  %p2055_p4 = scmp.lt.s32.totalorder %s47_s25, %s47_s25 }
  0x12   :  { %p2056_p5 = scmp.lt.s32.totalorder %s2054_s21, %s2050_s20 }
  0x14   :  { %p2057_p6 = por %p2056_p5, %p2055_p4 }
  0x16   :  { %p2058_p7 = pnand %p2057_p6, %p2051_p3 }
  0x18   :  { %2061 = shalt.err (!%p2058_p7)
}
  0x19   :  { %49 = dma.hbm_to_vmem [thread:$0]  %s2682_s2, 16, %s47_s25, [#allocation5]  }
  0x1a   :  { %s2062_s28 = scalar_lea.hbm %s2684_s4, 16 }
  0x1b   :  { %p2063_p8 = scmp.ne.s32.totalorder %s2684_s4, %s2062_s28  ;;  %p2066_p9 = scmp.lt.u32.totalorder %s2062_s28, %s2684_s4 }
  0x1d   :  { %p2068_p10 = pnand %p2066_p9, %p2063_p8 }
  0x1f   :  { %2071 = shalt.err (!%p2068_p10)
}
  0x20   :  { %s2072_s19 = scalar_lea.vmem %s67_s27, 16  ;;  %s2076_s1 = scalar_lea.vmem %s67_s27, 32 }
  0x21   :  { %p2073_p11 = scmp.ne.s32.totalorder %s67_s27, %s2072_s19  ;;  %p2077_p12 = scmp.lt.s32.totalorder %s67_s27, %s67_s27 }
  0x22   :  { %p2078_p13 = scmp.lt.s32.totalorder %s2076_s1, %s2072_s19 }
  0x24   :  { %p2079_p0 = por %p2078_p13, %p2077_p12 }
  0x26   :  { %p2080_p1 = pnand %p2079_p0, %p2073_p11 }
  0x28   :  { %2083 = shalt.err (!%p2080_p1)
}
  0x29   :  { %69 = dma.hbm_to_vmem [thread:$0]  %s2684_s4, 16, %s67_s27, [#allocation8]  }
  0x2a   :  { %s2274_s20 = smov [#allocation10]   ;;  %s2084_s24 = scalar_lea.hbm %s2687_s7, 256 }
  0x2b   :  { %s87_s21 = sshll.u32 %s2274_s20, 4  ;;  %p2085_p2 = scmp.ne.s32.totalorder %s2687_s7, %s2084_s24  ;;  %s88_s21 = int_to_ptr.vmem [resolvable:$true] %s87_s21 }
  0x2c   :  { %p2088_p3 = scmp.lt.u32.totalorder %s2084_s24, %s2687_s7 }
  0x2e   :  { %p2090_p4 = pnand %p2088_p3, %p2085_p2 }
  0x30   :  { %2093 = shalt.err (!%p2090_p4)
}
  0x31   :  { %s2094_s30 = scalar_lea.vmem %s88_s21, 256  ;;  %p2099_p6 = scmp.lt.s32.totalorder %s88_s21, %s88_s21 }
  0x32   :  { %p2095_p5 = scmp.ne.s32.totalorder %s88_s21, %s2094_s30  ;;  %p2100_p7 = scmp.lt.s32.totalorder %s2094_s30, %s2094_s30 }
  0x34   :  { %p2101_p8 = por %p2100_p7, %p2099_p6 }
  0x36   :  { %p2102_p9 = pnand %p2101_p8, %p2095_p5 }
  0x38   :  { %2105 = shalt.err (!%p2102_p9)
}
  0x39   :  { %s2275_s4 = smov 128   ;;  %s2276_s27 = smov 8  }
  0x3a   :  { %93 = dma.hbm_to_vmem [thread:$0]  %s2687_s7, 256, %s88_s21, [#allocation11], %s2275_s4, %s2275_s4, %s2276_s27  }
  0x3b   :  { %s2277_s1 = smov [#allocation13]   ;;  %s2278_s25 = smov [#allocation2]  }
  0x3c   :  { %s114_s2 = sshll.u32 %s2277_s1, 4  ;;  %s36_s20 = sshll.u32 %s2278_s25, 4  ;;  %s115_s2 = int_to_ptr.vmem [resolvable:$true] %s114_s2  ;;  %s37_s20 = int_to_ptr.vmem [resolvable:$true] %s36_s20 }
  0x3d   :  { %s2106_s24 = scalar_lea.hbm %s2691_s11, 16 }
  0x3e   :  { %p2107_p10 = scmp.ne.s32.totalorder %s2691_s11, %s2106_s24  ;;  %p2110_p11 = scmp.lt.u32.totalorder %s2106_s24, %s2691_s11 }
  0x40   :  { %p2112_p12 = pnand %p2110_p11, %p2107_p10 }
  0x42   :  { %2115 = shalt.err (!%p2112_p12)
}
  0x43   :  { %s2116_s7 = scalar_lea.vmem %s115_s2, 16  ;;  %s2120_s21 = scalar_lea.vmem %s115_s2, 32 }
  0x44   :  { %p2117_p13 = scmp.ne.s32.totalorder %s115_s2, %s2116_s7  ;;  %p2121_p0 = scmp.lt.s32.totalorder %s115_s2, %s115_s2 }
  0x45   :  { %p2122_p1 = scmp.lt.s32.totalorder %s2120_s21, %s2116_s7 }
  0x47   :  { %p2123_p2 = por %p2122_p1, %p2121_p0 }
  0x49   :  { %p2124_p3 = pnand %p2123_p2, %p2117_p13 }
  0x4b   :  { %2127 = shalt.err (!%p2124_p3)
}
  0x4c   :  { %117 = dma.hbm_to_vmem [thread:$0]  %s2691_s11, 16, %s115_s2, [#allocation14]  }
  0x4d   :  { %s2702_s19 = sld [smem:[#allocation25_spill]] }
  0x53   :  { %s2128_s1 = scalar_lea.hbm %s2702_s19, 128 }
  0x54   :  { %p2129_p4 = scmp.ne.s32.totalorder %s2702_s19, %s2128_s1  ;;  %p2132_p5 = scmp.lt.u32.totalorder %s2128_s1, %s2702_s19 }
  0x56   :  { %p2134_p6 = pnand %p2132_p5, %p2129_p4 }
  0x58   :  { %2137 = shalt.err (!%p2134_p6)
}
  0x59   :  { %s2138_s26 = scalar_lea.vmem %s37_s20, 128  ;;  %p2143_p8 = scmp.lt.s32.totalorder %s37_s20, %s37_s20 }
  0x5a   :  { %p2139_p7 = scmp.ne.s32.totalorder %s37_s20, %s2138_s26  ;;  %p2144_p9 = scmp.lt.s32.totalorder %s2138_s26, %s2138_s26 }
  0x5c   :  { %p2145_p10 = por %p2144_p9, %p2143_p8 }
  0x5e   :  { %p2146_p11 = pnand %p2145_p10, %p2139_p7 }
  0x60   :  { %2149 = shalt.err (!%p2146_p11)
}
  0x61   :  { %39 = dma.hbm_to_vmem [thread:$0]  %s2702_s19, 128, %s37_s20, [#allocation3]  }
  0x62   :  { %s2279_s28 = smov [#allocation6]   ;;  %s2280_s0 = smov [#allocation9]  }
  0x63   :  { %s56_s29 = sshll.u32 %s2279_s28, 4  ;;  %s78_s7 = sshll.u32 %s2280_s0, 4  ;;  %s57_s29 = int_to_ptr.vmem [resolvable:$true] %s56_s29  ;;  %s79_s7 = int_to_ptr.vmem [resolvable:$true] %s78_s7 }
  0x64   :  { %s2150_s4 = scalar_lea.hbm %s2683_s3, 16 }
  0x65   :  { %p2151_p12 = scmp.ne.s32.totalorder %s2683_s3, %s2150_s4  ;;  %p2154_p13 = scmp.lt.u32.totalorder %s2150_s4, %s2683_s3 }
  0x67   :  { %p2156_p0 = pnand %p2154_p13, %p2151_p12 }
  0x69   :  { %2159 = shalt.err (!%p2156_p0)
}
  0x6a   :  { %s2160_s20 = scalar_lea.vmem %s57_s29, 16  ;;  %s2164_s19 = scalar_lea.vmem %s57_s29, 32 }
  0x6b   :  { %p2161_p1 = scmp.ne.s32.totalorder %s57_s29, %s2160_s20  ;;  %p2165_p2 = scmp.lt.s32.totalorder %s57_s29, %s57_s29 }
  0x6c   :  { %p2166_p3 = scmp.lt.s32.totalorder %s2164_s19, %s2160_s20 }
  0x6e   :  { %p2167_p4 = por %p2166_p3, %p2165_p2 }
  0x70   :  { %p2168_p5 = pnand %p2167_p4, %p2161_p1 }
  0x72   :  { %2171 = shalt.err (!%p2168_p5)
}
  0x73   :  { %59 = dma.hbm_to_vmem [thread:$0]  %s2683_s3, 16, %s57_s29, [#allocation5]  }
  0x74   :  { %s2172_s11 = scalar_lea.hbm %s2686_s6, 16 }
  0x75   :  { %p2173_p6 = scmp.ne.s32.totalorder %s2686_s6, %s2172_s11  ;;  %p2176_p7 = scmp.lt.u32.totalorder %s2172_s11, %s2686_s6 }
  0x77   :  { %p2178_p8 = pnand %p2176_p7, %p2173_p6 }
  0x79   :  { %2181 = shalt.err (!%p2178_p8)
}
  0x7a   :  { %s2182_s30 = scalar_lea.vmem %s79_s7, 16  ;;  %s2186_s4 = scalar_lea.vmem %s79_s7, 32 }
  0x7b   :  { %p2183_p9 = scmp.ne.s32.totalorder %s79_s7, %s2182_s30  ;;  %p2187_p10 = scmp.lt.s32.totalorder %s79_s7, %s79_s7 }
  0x7c   :  { %p2188_p11 = scmp.lt.s32.totalorder %s2186_s4, %s2182_s30 }
  0x7e   :  { %p2189_p12 = por %p2188_p11, %p2187_p10 }
  0x80   :  { %p2190_p13 = pnand %p2189_p12, %p2183_p9 }
  0x82   :  { %2193 = shalt.err (!%p2190_p13)
}
  0x83   :  { %81 = dma.hbm_to_vmem [thread:$0]  %s2686_s6, 16, %s79_s7, [#allocation8]  }
  0x84   :  { %s2281_s27 = smov [#allocation12]   ;;  %s2282_s1 = smov [#allocation15]  }
  0x85   :  { %s104_s18 = sshll.u32 %s2281_s27, 4  ;;  %s124_s25 = sshll.u32 %s2282_s1, 4  ;;  %s105_s18 = int_to_ptr.vmem [resolvable:$true] %s104_s18  ;;  %s125_s25 = int_to_ptr.vmem [resolvable:$true] %s124_s25 }
  0x86   :  { %s2194_s22 = scalar_lea.hbm %s2690_s10, 16 }
  0x87   :  { %p2195_p0 = scmp.ne.s32.totalorder %s2690_s10, %s2194_s22  ;;  %p2198_p1 = scmp.lt.u32.totalorder %s2194_s22, %s2690_s10 }
  0x89   :  { %p2200_p2 = pnand %p2198_p1, %p2195_p0 }
  0x8b   :  { %2203 = shalt.err (!%p2200_p2)
}
  0x8c   :  { %s2204_s6 = scalar_lea.vmem %s105_s18, 16  ;;  %s2208_s7 = scalar_lea.vmem %s105_s18, 32 }
  0x8d   :  { %p2205_p3 = scmp.ne.s32.totalorder %s105_s18, %s2204_s6  ;;  %p2209_p4 = scmp.lt.s32.totalorder %s105_s18, %s105_s18 }
  0x8e   :  { %p2210_p5 = scmp.lt.s32.totalorder %s2208_s7, %s2204_s6 }
  0x90   :  { %p2211_p6 = por %p2210_p5, %p2209_p4 }
  0x92   :  { %p2212_p7 = pnand %p2211_p6, %p2205_p3 }
  0x94   :  { %2215 = shalt.err (!%p2212_p7)
}
  0x95   :  { %107 = dma.hbm_to_vmem [thread:$0]  %s2690_s10, 16, %s105_s18, [#allocation11]  }
  0x96   :  { %s2216_s30 = scalar_lea.hbm %s2692_s12, 16 }
  0x97   :  { %p2217_p8 = scmp.ne.s32.totalorder %s2692_s12, %s2216_s30  ;;  %p2220_p9 = scmp.lt.u32.totalorder %s2216_s30, %s2692_s12 }
  0x99   :  { %p2222_p10 = pnand %p2220_p9, %p2217_p8 }
  0x9b   :  { %2225 = shalt.err (!%p2222_p10)
}
  0x9c   :  { %s2226_s1 = scalar_lea.vmem %s125_s25, 16  ;;  %s2230_s20 = scalar_lea.vmem %s125_s25, 32 }
  0x9d   :  { %p2227_p11 = scmp.ne.s32.totalorder %s125_s25, %s2226_s1  ;;  %p2231_p12 = scmp.lt.s32.totalorder %s125_s25, %s125_s25 }
  0x9e   :  { %p2232_p13 = scmp.lt.s32.totalorder %s2230_s20, %s2226_s1 }
  0xa0   :  { %p2233_p0 = por %p2232_p13, %p2231_p12 }
  0xa2   :  { %p2234_p1 = pnand %p2233_p0, %p2227_p11 }
  0xa4   :  { %2237 = shalt.err (!%p2234_p1)
}
  0xa5   :  { %127 = dma.hbm_to_vmem [thread:$0]  %s2692_s12, 16, %s125_s25, [#allocation14]  }
  0xa6   :  { %s2283_s19 = smov [#allocation16]   ;;  %s2238_s26 = scalar_lea.hbm %s2694_s14, 16 }
  0xa7   :  { %s136_s22 = sshll.u32 %s2283_s19, 4  ;;  %p2239_p2 = scmp.ne.s32.totalorder %s2694_s14, %s2238_s26  ;;  %s137_s22 = int_to_ptr.vmem [resolvable:$true] %s136_s22 }
  0xa8   :  { %p2242_p3 = scmp.lt.u32.totalorder %s2238_s26, %s2694_s14 }
  0xaa   :  { %p2244_p4 = pnand %p2242_p3, %p2239_p2 }
  0xac   :  { %2247 = shalt.err (!%p2244_p4)
}
  0xad   :  { %s2248_s28 = scalar_lea.vmem %s137_s22, 16  ;;  %s2252_s12 = scalar_lea.vmem %s137_s22, 32 }
  0xae   :  { %p2249_p5 = scmp.ne.s32.totalorder %s137_s22, %s2248_s28  ;;  %p2253_p6 = scmp.lt.s32.totalorder %s137_s22, %s137_s22 }
  0xaf   :  { %p2254_p7 = scmp.lt.s32.totalorder %s2252_s12, %s2248_s28 }
  0xb1   :  { %p2255_p8 = por %p2254_p7, %p2253_p6 }
  0xb3   :  { %p2256_p9 = pnand %p2255_p8, %p2249_p5 }
  0xb5   :  { %2259 = shalt.err (!%p2256_p9)
}
  0xb6   :  { %139 = dma.hbm_to_vmem [thread:$0]  %s2694_s14, 16, %s137_s22, [#allocation17]  }
  0xb7   :  { %2260 = dma.done.wait [#allocation3], 128  }
  0xb8   :  { %2261 = vsyncadd [#allocation3], 4294967168 }
  0xb9   :  { %2262 = dma.done.wait [#allocation5], 32  }
  0xba   :  { %2263 = vsyncadd [#allocation5], 4294967264 }
  0xbb   :  { %2264 = dma.done.wait [#allocation8], 32  }
  0xbc   :  { %2265 = vsyncadd [#allocation8], 4294967264 }
  0xbd   :  { %2266 = dma.done.wait [#allocation11], 272  }
  0xbe   :  { %2267 = vsyncadd [#allocation11], 4294967024 }
  0xbf   :  { %2268 = dma.done.wait [#allocation14], 32  }
  0xc0   :  { %2269 = vsyncadd [#allocation14], 4294967264 }
  0xc1   :  { %2270 = dma.done.wait [#allocation17], 16  }
  0xc2   :  { %2271 = vsyncadd [#allocation17], 4294967280  ;;  %vm199_vm0 = vcmask 1046528   ;;  %vm186_vm1 = vcmask 56320   ;;  %v178_v0 = vld [vmem:[#allocation2] sm:$0x7f] }
  0xc3   :  { %s2703_s4 = sld [smem:[#allocation24_spill]]  ;;  %1758 = vmatprep.subr.msk.mxu0 %vm199_vm0, %v178_v0  ;;  %v1651_v5 = vld [vmem:[#allocation4] ss:$0 sm:$0xff]  ;;  %vm290_vm2 = vcmask 261120   ;;  %v400_v38 = vld [vmem:[%s2685_s5] sm:$0xff]  ;;  %v402_v40 = vld [vmem:[%s2685_s5 + $0x10] sm:$0xff] }
  0xc4   :  { %1759 = vmatpush3.msk.msra.mxu0 %vm199_vm0, %v178_v0  ;;  %v401_v39 = vld [vmem:[%s2685_s5 + $0x8] sm:$0xff]  ;;  %v403_v42 = vld [vmem:[%s2685_s5 + $0x18] sm:$0xff]  ;;  %v508_v44 = vld [vmem:[%s2688_s8] sm:$0xff]  ;;  %vm2285_vm3 = vmmov 0   ;;  %vm610_vm4 = vcmask 130048   ;;  %s2288_s21 = smov 112  }
  0xc5   :  { %v1883_v41 = vpack.c.bf16 %v401_v39, %v400_v38  ;;  %v1887_v43 = vpack.c.bf16 %v403_v42, %v402_v40  ;;  %v509_v45 = vld [vmem:[%s2688_s8 + $0x8] sm:$0xff]  ;;  %vm2565_vm5 = vmpackc.low %vm610_vm4, %vm610_vm4  ;;  %s2289_s30 = smov 80   ;;  %s2290_s18 = smov 16  }
  0xc6   :  { %v1891_v46 = vpack.c.bf16 %v509_v45, %v508_v44  ;;  %v1657_v60 = vld [vmem:[#allocation6] ss:$0 sm:$0xff]  ;;  %v1658_v62 = vld [vmem:[#allocation7] ss:$0 sm:$0xff] }
  0xc7   :  { %1884 = vmatprep.subr.bf16.mxu1 %v1883_v41 }
  0xc8   :  { %1886 = vmatpush3.bf16.msra.mxu1 %v1883_v41  ;;  %1892 = vmatprep.subr.bf16.mxu0 %v1891_v46 }
  0xc9   :  { %v174_v1 = vld [vmem:[%s2703_s4] sm:$0xff]  ;;  %v175_v2 = vld [vmem:[%s2703_s4 + $0x8] sm:$0xff]  ;;  %v176_v3 = vld [vmem:[%s2703_s4 + $0x10] sm:$0xff]  ;;  %1888 = vmatprep.subr.bf16.mxu1 %v1887_v43 }
  0xca   :  { %1760 = vmatprep.mubr.msk.f32.mxu0 %vm186_vm1, %v174_v1  ;;  %v177_v4 = vld [vmem:[%s2703_s4 + $0x18] sm:$0xff] }
  0xcb   :  { %1761 = vmatmul.mubr.msk.f32.vlgmr.msra.gmra.mrb[0].mxu0 %vm186_vm1, %v175_v2 }
  0xcc   :  { %1763 = vmatprep.mubr.msk.f32.mxu0 %vm186_vm1, %v176_v3  ;;  %1890 = vmatpush3.bf16.msra.mxu1 %v1887_v43 }
  0xcd   :  { %1894 = vmatpush3.bf16.msra.mxu0 %v1891_v46 }
  0xcf   :  { %1764 = vmatmul.mubr.msk.f32.gmra.mrb[2].mxu0 %vm186_vm1, %v177_v4 }
 0x19e   :  { %v1762_v6 = vpop.f32.mrb[0].mxu0 }
 0x19f   :  { %v269_v7 = vpop.f32.mrb[1].mxu0  ;;  %v275_v9 = vadd.f32 %v1762_v6, %v1651_v5 }
 0x1a0   :  { %v270_v8 = vadd.f32 %v1651_v5, %v269_v7 }
 0x1a1   :  { %v294_v16 = vsel %vm290_vm2, %v275_v9, 0.0 }
 0x1a2   :  { %v1765_v10 = vpop.f32.mrb[2].mxu0  ;;  %v291_v11 = vsel %vm290_vm2, %v270_v8, 0.0 }
 0x1a3   :  { %v279_v12 = vpop.f32.mrb[3].mxu0  ;;  %292 = vadd.xlane.f32.xlu0 %v291_v11  ;;  %v285_v13 = vadd.f32 %v1765_v10, %v1651_v5 }
 0x1a4   :  { %v280_v14 = vadd.f32 %v1651_v5, %v279_v12 }
 0x1a5   :  { %v300_v17 = vsel %vm290_vm2, %v285_v13, 0.0 }
 0x1a6   :  { %v297_v15 = vsel %vm290_vm2, %v280_v14, 0.0 }
 0x1a7   :  { %298 = vadd.xlane.f32.xlu1 %v297_v15  ;;  %295 = vadd.xlane.f32.xlu0 %v294_v16 }
 0x1ab   :  { %301 = vadd.xlane.f32.xlu1 %v300_v17 }
 0x230   :  { %v293_v18 = vpop.xlane.xlu0 %292 }
 0x231   :  { %v304_v19 = vmul.f32 0.03125, %v293_v18 }
 0x233   :  { %v308_v20 = vsub.f32 %v270_v8, %v304_v19 }
 0x234   :  { %v299_v21 = vpop.xlane.xlu1 %298  ;;  %v296_v22 = vpop.xlane.xlu0 %295 }
 0x235   :  { %v306_v23 = vmul.f32 0.03125, %v299_v21  ;;  %v305_v24 = vmul.f32 0.03125, %v296_v22  ;;  %v312_v25 = vmul.f32 %v308_v20, %v308_v20 }
 0x237   :  { %v310_v26 = vsub.f32 %v280_v14, %v306_v23  ;;  %v309_v27 = vsub.f32 %v275_v9, %v305_v24  ;;  %v316_v28 = vsel %vm290_vm2, %v312_v25, 0.0 }
 0x238   :  { %v302_v29 = vpop.xlane.xlu1 %301  ;;  %317 = vadd.xlane.f32.xlu0 %v316_v28 }
 0x239   :  { %v307_v30 = vmul.f32 0.03125, %v302_v29  ;;  %v314_v31 = vmul.f32 %v310_v26, %v310_v26  ;;  %v313_v32 = vmul.f32 %v309_v27, %v309_v27 }
 0x23b   :  { %v311_v33 = vsub.f32 %v285_v13, %v307_v30  ;;  %v322_v34 = vsel %vm290_vm2, %v314_v31, 0.0  ;;  %v319_v35 = vsel %vm290_vm2, %v313_v32, 0.0 }
 0x23c   :  { %323 = vadd.xlane.f32.xlu0 %v322_v34  ;;  %320 = vadd.xlane.f32.xlu1 %v319_v35 }
 0x23d   :  { %v315_v36 = vmul.f32 %v311_v33, %v311_v33 }
 0x23f   :  { %v325_v37 = vsel %vm290_vm2, %v315_v36, 0.0 }
 0x240   :  { %326 = vadd.xlane.f32.xlu1 %v325_v37 }
 0x2c5   :  { %v318_v47 = vpop.xlane.xlu0 %317 }
 0x2c6   :  { %v328_v48 = vmul.f32 0.03125, %v318_v47 }
 0x2c8   :  { %v332_v49 = vadd.f32 1e-05, %v328_v48 }
 0x2c9   :  { %v321_v50 = vpop.xlane.xlu1 %320  ;;  %v324_v51 = vpop.xlane.xlu0 %323 }
 0x2ca   :  { %2000 = vrsqrt.f32 %v332_v49  ;;  %v329_v52 = vmul.f32 0.03125, %v321_v50  ;;  %v330_v53 = vmul.f32 0.03125, %v324_v51  ;;  %v510_v49 = vld [vmem:[%s2688_s8 + $0x10] sm:$0xff]  ;;  %v511_v50 = vld [vmem:[%s2688_s8 + $0x18] sm:$0xff]  ;;  %s2287_s8 = smov 96  }
 0x2cb   :  { %v1895_v51 = vpack.c.bf16 %v511_v50, %v510_v49 }
 0x2cc   :  { %v333_v54 = vadd.f32 1e-05, %v329_v52  ;;  %v334_v55 = vadd.f32 1e-05, %v330_v53  ;;  %v1659_v52 = vld [vmem:[#allocation9] ss:$0 sm:$0xff] }
 0x2cd   :  { %v327_v56 = vpop.xlane.xlu1 %326  ;;  %1896 = vmatprep.subr.bf16.mxu0 %v1895_v51 }
 0x2ce   :  { %2002 = vrsqrt.f32 %v333_v54  ;;  %v331_v57 = vmul.f32 0.03125, %v327_v56  ;;  %1898 = vmatpush3.bf16.msra.mxu0 %v1895_v51 }
 0x2cf   :  { %2004 = vrsqrt.f32 %v334_v55 }
 0x2d0   :  { %v335_v58 = vadd.f32 1e-05, %v331_v57 }
 0x2d2   :  { %2006 = vrsqrt.f32 %v335_v58 }
 0x2d4   :  { %v2001_v59 = vpop.eup %2000 }
 0x2d5   :  { %v340_v61 = vmul.f32 %v2001_v59, %v308_v20 }
 0x2d7   :  { %v350_v63 = vmul.f32 %v1657_v60, %v340_v61  ;;  %v2284_v61 = vmov 0.0|0.0  }
 0x2d8   :  { %v2003_v0 = vpop.eup %2002  ;;  %1899 = vmatprep.subr.bf16.mxu1 %v2284_v61  ;;  %1903 = vmatprep.subr.bf16.mxu0 %v2284_v61 }
 0x2d9   :  { %v2005_v1 = vpop.eup %2004  ;;  %v341_v2 = vmul.f32 %v2003_v0, %v309_v27  ;;  %v360_v3 = vadd.f32 %v1658_v62, %v350_v63 }
 0x2da   :  { %v342_v4 = vmul.f32 %v2005_v1, %v310_v26 }
 0x2db   :  { %v351_v5 = vmul.f32 %v1657_v60, %v341_v2  ;;  %v368_v6 = vmul.f32 0.044715, %v360_v3  ;;  %v364_v34 = vmul.f32 0.5, %v360_v3 }
 0x2dc   :  { %v2007_v7 = vpop.eup %2006  ;;  %v352_v8 = vmul.f32 %v1657_v60, %v342_v4 }
 0x2dd   :  { %v361_v9 = vadd.f32 %v1658_v62, %v351_v5  ;;  %v343_v10 = vmul.f32 %v2007_v7, %v311_v33  ;;  %v372_v11 = vmul.f32 %v368_v6, %v360_v3 }
 0x2de   :  { %v362_v12 = vadd.f32 %v1658_v62, %v352_v8  ;;  %v609_v8 = vld [vmem:[#allocation10] sm:$0xff] }
 0x2df   :  { %v353_v13 = vmul.f32 %v1657_v60, %v343_v10  ;;  %v376_v14 = vmul.f32 %v372_v11, %v360_v3  ;;  %v369_v15 = vmul.f32 0.044715, %v361_v9  ;;  %v365_v39 = vmul.f32 0.5, %v361_v9 }
 0x2e0   :  { %v370_v16 = vmul.f32 0.044715, %v362_v12  ;;  %v366_v41 = vmul.f32 0.5, %v362_v12 }
 0x2e1   :  { %v363_v17 = vadd.f32 %v1658_v62, %v353_v13  ;;  %v380_v18 = vadd.f32 %v376_v14, %v360_v3  ;;  %v373_v19 = vmul.f32 %v369_v15, %v361_v9  ;;  %v2286_v62 = vmov 0.0  }
 0x2e2   :  { %v374_v20 = vmul.f32 %v370_v16, %v362_v12 }
 0x2e3   :  { %v384_v21 = vmul.f32 0.7978846, %v380_v18  ;;  %v377_v22 = vmul.f32 %v373_v19, %v361_v9  ;;  %v371_v23 = vmul.f32 0.044715, %v363_v17  ;;  %v367_v46 = vmul.f32 0.5, %v363_v17 }
 0x2e4   :  { %v378_v24 = vmul.f32 %v374_v20, %v362_v12 }
 0x2e5   :  { %2008 = vtanh.f32 %v384_v21  ;;  %v381_v25 = vadd.f32 %v377_v22, %v361_v9  ;;  %v375_v26 = vmul.f32 %v371_v23, %v363_v17 }
 0x2e6   :  { %v382_v27 = vadd.f32 %v378_v24, %v362_v12 }
 0x2e7   :  { %v385_v28 = vmul.f32 0.7978846, %v381_v25  ;;  %v379_v29 = vmul.f32 %v375_v26, %v363_v17 }
 0x2e8   :  { %v386_v30 = vmul.f32 0.7978846, %v382_v27 }
 0x2e9   :  { %2010 = vtanh.f32 %v385_v28  ;;  %v383_v31 = vadd.f32 %v379_v29, %v363_v17 }
 0x2ea   :  { %2012 = vtanh.f32 %v386_v30 }
 0x2eb   :  { %v387_v32 = vmul.f32 0.7978846, %v383_v31 }
 0x2ed   :  { %2014 = vtanh.f32 %v387_v32  ;;  %v949_v32 = vld [vmem:[#allocation10 + $0x8] sm:$0xff] }
 0x2ef   :  { %v2009_v33 = vpop.eup %2008 }
 0x2f0   :  { %v392_v35 = vadd.f32 1.0, %v2009_v33 }
 0x2f2   :  { %v396_v36 = vmul.f32 %v392_v35, %v364_v34 }
 0x2f3   :  { %v2011_v37 = vpop.eup %2010 }
 0x2f4   :  { %v2013_v38 = vpop.eup %2012  ;;  %1774 = vmatprep.mubr.msk.f32.mxu1 %vm290_vm2, %v396_v36  ;;  %v393_v40 = vadd.f32 1.0, %v2011_v37 }
 0x2f5   :  { %v394_v42 = vadd.f32 1.0, %v2013_v38 }
 0x2f6   :  { %v397_v43 = vmul.f32 %v393_v40, %v365_v39 }
 0x2f7   :  { %v2015_v44 = vpop.eup %2014  ;;  %v398_v45 = vmul.f32 %v394_v42, %v366_v41 }
 0x2f8   :  { %1775 = vmatmul.mubr.msk.f32.vlgmr.msra.gmra.mrb[0].mxu1 %vm290_vm2, %v397_v43  ;;  %v395_v47 = vadd.f32 1.0, %v2015_v44 }
 0x2f9   :  { %1777 = vmatprep.mubr.msk.f32.mxu1 %vm290_vm2, %v398_v45 }
 0x2fa   :  { %v399_v48 = vmul.f32 %v395_v47, %v367_v46 }
 0x2fc   :  { %1778 = vmatmul.mubr.msk.f32.gmra.mrb[2].mxu1 %vm290_vm2, %v399_v48 }
 0x2fd   :  { %1798 = vmatprep.mubr.msk.f32.mxu1 %vm2285_vm3, %v2286_v62 }
 0x3cb   :  { %v1776_v53 = vpop.f32.mrb[0].mxu1 }
 0x3cc   :  { %v489_v54 = vpop.f32.mrb[1].mxu1  ;;  %v495_v56 = vadd.f32 %v1776_v53, %v1659_v52 }
 0x3cd   :  { %v490_v55 = vadd.f32 %v1659_v52, %v489_v54 }
 0x3cf   :  { %v1779_v57 = vpop.f32.mrb[2].mxu1  ;;  %1788 = vmatprep.mubr.msk.f32.mxu0 %vm290_vm2, %v490_v55 }
 0x3d0   :  { %v499_v58 = vpop.f32.mrb[3].mxu1  ;;  %1789 = vmatmul.mubr.msk.f32.vlgmr.msra.gmra.mrb[4].mxu0 %vm290_vm2, %v495_v56  ;;  %v505_v60 = vadd.f32 %v1779_v57, %v1659_v52 }
 0x3d1   :  { %v500_v59 = vadd.f32 %v1659_v52, %v499_v58 }
 0x3d3   :  { %1791 = vmatprep.mubr.msk.f32.mxu0 %vm290_vm2, %v500_v59 }
 0x3d4   :  { %1792 = vmatmul.mubr.msk.f32.gmra.mrb[6].mxu0 %vm290_vm2, %v505_v60 }
 0x3d5   :  { %1805 = vmatprep.mubr.msk.f32.mxu0 %vm2285_vm3, %v2286_v62 }
 0x4a3   :  { %v1790_v63 = vpop.f32.mrb[4].mxu0 }
 0x4a4   :  { %v590_v0 = vpop.f32.mrb[5].mxu0 }
 0x4a5   :  { %v1900_v2 = vpack.c.bf16 %v1790_v63, %v590_v0  ;;  %v2569_v3 = vpack.i.bf16 %v1790_v63, %v590_v0 }
 0x4a7   :  { %v1793_v4 = vpop.f32.mrb[6].mxu0  ;;  %1902 = vmatpush3.bf16.xpose.msk.msra.mxu1 %vm2565_vm5, %v1900_v2 }
 0x4a8   :  { %v600_v5 = vpop.f32.mrb[7].mxu0  ;;  %1913 = vmatprep.subr.bf16.mxu1 %v2284_v61 }
 0x4a9   :  { %v1904_v6 = vpack.c.bf16 %v1793_v4, %v600_v5  ;;  %v2574_v7 = vpack.i.bf16 %v1793_v4, %v600_v5 }
 0x4ab   :  { %1906 = vmatpush3.bf16.xpose.msk.msra.mxu0 %vm2565_vm5, %v1904_v6 }
 0x4ac   :  { %1907 = vmatprep.subr.bf16.mxu0 %v2284_v61 }
 0x4ae   :  { %1799 = vmatmul.mubr.msk.f32.vlgmr.msra.gmra.mrb[4].mxu1 %vm610_vm4, %v609_v8 }
 0x4af   :  { %1826 = vmatprep.mubr.msk.f32.mxu1 %vm2285_vm3, %v2286_v62 }
 0x4b2   :  { %1806 = vmatmul.mubr.msk.f32.vlgmr.msra.gmra.mrb[8].mxu0 %vm610_vm4, %v609_v8 }
 0x4b3   :  { %1812 = vmatprep.mubr.msk.f32.mxu0 %vm2285_vm3, %v2286_v62 }
 0x581   :  { %v686_v9 = vpop.f32.mrb[4].mxu1 }
 0x582   :  { %v766_v10 = vmul.f32 0.25, %v686_v9  ;;  %v1800_v11 = vpop.f32.mrb[5].mxu1 }
 0x584   :  { %v768_v12 = vsel %vm610_vm4, %v766_v10, -inf }
 0x585   :  { %769 = vmax.xlane.f32.xlu0 %v768_v12  ;;  %v762_v13 = vpop.f32.mrb[8].mxu0 }
 0x586   :  { %v767_v14 = vmul.f32 0.25, %v762_v13  ;;  %v1807_v15 = vpop.f32.mrb[9].mxu0 }
 0x588   :  { %v771_v16 = vsel %vm610_vm4, %v767_v14, -inf }
 0x589   :  { %772 = vmax.xlane.f32.xlu1 %v771_v16 }
 0x59a   :  { %1976 = vrot.lane.b32.xlu1 %v2574_v7, %s2287_s8 }
 0x59e   :  { %1981 = vrot.lane.b32.xlu1 %v2569_v3, %s2288_s21 }
 0x612   :  { %v770_v17 = vpop.xlane.xlu0 %769 }
 0x613   :  { %v774_v18 = vsub.f32 %v766_v10, %v770_v17 }
 0x615   :  { %v776_v19 = vmul.f32 1.442695, %v774_v18 }
 0x616   :  { %v773_v20 = vpop.xlane.xlu1 %772 }
 0x617   :  { %2016 = vpow2.f32 %v776_v19  ;;  %v775_v21 = vsub.f32 %v767_v14, %v773_v20 }
 0x619   :  { %v778_v22 = vmul.f32 1.442695, %v775_v21 }
 0x61a   :  { %v1977_v23 = vpop.permute.xlu1 %1976 }
 0x61b   :  { %2018 = vpow2.f32 %v778_v22  ;;  %v1979_v39 = vunpack.i.h.bf16 %v1977_v23  ;;  %v1978_v40 = vunpack.i.l.bf16 %v1977_v23  ;;  %v1302_v23 = vld [vmem:[%s2689_s9 + $0x8] sm:$0xff] }
 0x61d   :  { %v1911_v43 = vpack.c.bf16 %v1979_v39, %v1978_v40 }
 0x61e   :  { %v1982_v24 = vpop.permute.xlu1 %1981 }
 0x61f   :  { %v1984_v25 = vunpack.i.h.bf16 %v1982_v24  ;;  %v1983_v26 = vunpack.i.l.bf16 %v1982_v24 }
 0x621   :  { %v2017_v27 = vpop.eup %2016  ;;  %v1914_v28 = vpack.c.bf16 %v1984_v25, %v1983_v26  ;;  %v1303_v25 = vld [vmem:[%s2689_s9 + $0x10] sm:$0xff]  ;;  %v1304_v26 = vld [vmem:[%s2689_s9 + $0x18] sm:$0xff] }
 0x622   :  { %v780_v29 = vsel %vm610_vm4, %v2017_v27, 0.0 }
 0x623   :  { %781 = vadd.xlane.f32.xlu0 %v780_v29  ;;  %1916 = vmatpush3.bf16.xpose.msk.msra.mxu1 %vm2565_vm5, %v1914_v28 }
 0x624   :  { %1921 = vmatprep.subr.bf16.mxu1 %v2284_v61 }
 0x625   :  { %v2019_v30 = vpop.eup %2018 }
 0x626   :  { %v783_v31 = vsel %vm610_vm4, %v2019_v30, 0.0 }
 0x627   :  { %784 = vadd.xlane.f32.xlu1 %v783_v31 }
 0x62a   :  { %1827 = vmatmul.mubr.msk.f32.vlgmr.msra.gmra.mrb[6].mxu1 %vm610_vm4, %v949_v32 }
 0x62b   :  { %1840 = vmatprep.mubr.msk.f32.mxu1 %vm2285_vm3, %v2286_v62 }
 0x638   :  { %1986 = vrot.lane.b32.xlu1 %v2574_v7, %s2288_s21 }
 0x639   :  { %1971 = vrot.lane.b32.xlu0 %v2569_v3, %s2287_s8 }
 0x6b0   :  { %v782_v33 = vpop.xlane.xlu0 %781 }
 0x6b1   :  { %2020 = vrcp.f32 %v782_v33 }
 0x6b4   :  { %v1972_v34 = vpop.permute.xlu0 %1971  ;;  %v785_v35 = vpop.xlane.xlu1 %784 }
 0x6b5   :  { %v1974_v36 = vunpack.i.h.bf16 %v1972_v34  ;;  %v1973_v37 = vunpack.i.l.bf16 %v1972_v34  ;;  %2022 = vrcp.f32 %v785_v35 }
 0x6b7   :  { %v1908_v38 = vpack.c.bf16 %v1974_v36, %v1973_v37  ;;  %v1684_v36 = vld [vmem:[#allocation12] ss:$0 sm:$0xff] }
 0x6b8   :  { %v1987_v45 = vpop.permute.xlu1 %1986 }
 0x6b9   :  { %1909 = vmatpush3.bf16.msra.mxu0 %v1908_v38  ;;  %v1989_v47 = vunpack.i.h.bf16 %v1987_v45  ;;  %v1988_v48 = vunpack.i.l.bf16 %v1987_v45 }
 0x6ba   :  { %1910 = vmatprep.subr.bf16.mxu0 %v2284_v61 }
 0x6bb   :  { %v2021_v41 = vpop.eup %2020  ;;  %v1918_v49 = vpack.c.bf16 %v1989_v47, %v1988_v48 }
 0x6bc   :  { %v788_v42 = vmul.f32 %v2021_v41, %v2017_v27  ;;  %v1931_v27 = vpack.c.bf16 %v1304_v26, %v1303_v25 }
 0x6be   :  { %1813 = vmatmul.mubr.msk.f32.vlgmr.msra.gmra.mrb[10].mxu0 %vm610_vm4, %v788_v42 }
 0x6bf   :  { %v2023_v44 = vpop.eup %2022  ;;  %1912 = vmatpush3.bf16.msra.mxu0 %v1911_v43  ;;  %1819 = vmatprep.mubr.msk.f32.mxu0 %vm2285_vm3, %v2286_v62 }
 0x6c0   :  { %v789_v46 = vmul.f32 %v2023_v44, %v2019_v30  ;;  %1917 = vmatprep.subr.bf16.mxu0 %v2284_v61 }
 0x6c2   :  { %1820 = vmatmul.mubr.msk.f32.vlgmr.msra.gmra.mrb[12].mxu0 %vm610_vm4, %v789_v46 }
 0x6c3   :  { %1833 = vmatprep.mubr.msk.f32.mxu0 %vm2285_vm3, %v2286_v62 }
 0x6c8   :  { %1920 = vmatpush3.bf16.xpose.msk.msra.mxu0 %vm2565_vm5, %v1918_v49 }
 0x6c9   :  { %1924 = vmatprep.subr.bf16.mxu0 %v2284_v61 }
 0x6cf   :  { %1834 = vmatmul.mubr.msk.f32.vlgmr.msra.gmra.mrb[14].mxu0 %vm610_vm4, %v949_v32 }
 0x6d0   :  { %1847 = vmatprep.mubr.msk.f32.mxu0 %vm2285_vm3, %v2286_v62 }
 0x6fd   :  { %v1027_v50 = vpop.f32.mrb[6].mxu1 }
 0x6fe   :  { %v1109_v51 = vmul.f32 0.25, %v1027_v50  ;;  %v1828_v52 = vpop.f32.mrb[7].mxu1 }
 0x700   :  { %v1111_v53 = vsel %vm610_vm4, %v1109_v51, -inf }
 0x701   :  { %1112 = vmax.xlane.f32.xlu0 %v1111_v53  ;;  %v1437_v53 = vld [vmem:[%s2693_s13] sm:$0xff] }
 0x78e   :  { %v1113_v54 = vpop.xlane.xlu0 %1112 }
 0x78f   :  { %v1117_v55 = vsub.f32 %v1109_v51, %v1113_v54  ;;  %v1438_v54 = vld [vmem:[%s2693_s13 + $0x8] sm:$0xff] }
 0x791   :  { %v1119_v56 = vmul.f32 1.442695, %v1117_v55  ;;  %v865_v57 = vpop.f32.mrb[10].mxu0  ;;  %v1935_v55 = vpack.c.bf16 %v1438_v54, %v1437_v53 }
 0x792   :  { %v1814_v58 = vpop.f32.mrb[11].mxu0 }
 0x793   :  { %2024 = vpow2.f32 %v1119_v56  ;;  %v1439_v56 = vld [vmem:[%s2693_s13 + $0x10] sm:$0xff] }
 0x795   :  { %v944_v59 = vpop.f32.mrb[12].mxu0 }
 0x796   :  { %v1821_v60 = vpop.f32.mrb[13].mxu0 }
 0x79d   :  { %v2025_v61 = vpop.eup %2024 }
 0x79e   :  { %v1123_v63 = vsel %vm610_vm4, %v2025_v61, 0.0 }
 0x79f   :  { %1124 = vadd.xlane.f32.xlu0 %v1123_v63 }
 0x7a2   :  { %v1105_v0 = vpop.f32.mrb[14].mxu0 }
 0x7a3   :  { %v1110_v62 = vmul.f32 0.25, %v1105_v0  ;;  %v1835_v1 = vpop.f32.mrb[15].mxu0 }
 0x7a5   :  { %v1114_v2 = vsel %vm610_vm4, %v1110_v62, -inf }
 0x7a6   :  { %1115 = vmax.xlane.f32.xlu1 %v1114_v2  ;;  %v1687_v2 = vld [vmem:[#allocation13] ss:$0 sm:$0xff] }
 0x7b7   :  { %1996 = vrot.lane.b32.xlu1 %v2574_v7, %s2289_s30 }
 0x82c   :  { %v1125_v14 = vpop.xlane.xlu0 %1124 }
 0x833   :  { %v1116_v4 = vpop.xlane.xlu1 %1115 }
 0x834   :  { %v1118_v5 = vsub.f32 %v1110_v62, %v1116_v4 }
 0x836   :  { %v1121_v6 = vmul.f32 1.442695, %v1118_v5  ;;  %v1688_v5 = vld [vmem:[#allocation15] ss:$0 sm:$0xff] }
 0x837   :  { %v1997_v8 = vpop.permute.xlu1 %1996 }
 0x838   :  { %2026 = vpow2.f32 %v1121_v6  ;;  %v1999_v9 = vunpack.i.h.bf16 %v1997_v8  ;;  %v1998_v10 = vunpack.i.l.bf16 %v1997_v8 }
 0x839   :  { %2028 = vrcp.f32 %v1125_v14  ;;  %v1548_v14 = vld [vmem:[%s2695_s15 + $0x8] sm:$0xff] }
 0x83a   :  { %v1925_v11 = vpack.c.bf16 %v1999_v9, %v1998_v10 }
 0x83c   :  { %1926 = vmatpush3.bf16.msra.mxu0 %v1925_v11 }
 0x83d   :  { %1936 = vmatprep.subr.bf16.mxu0 %v1935_v55 }
 0x842   :  { %v2027_v12 = vpop.eup %2026 }
 0x843   :  { %v1126_v13 = vsel %vm610_vm4, %v2027_v12, 0.0  ;;  %v2029_v18 = vpop.eup %2028 }
 0x844   :  { %1127 = vadd.xlane.f32.xlu0 %v1126_v13  ;;  %v1131_v20 = vmul.f32 %v2029_v18, %v2025_v61  ;;  %v1547_v13 = vld [vmem:[%s2695_s15] sm:$0xff] }
 0x845   :  { %v1689_v18 = vld [vmem:[#allocation16] ss:$0 sm:$0xff] }
 0x85a   :  { %1991 = vrot.lane.b32.xlu0 %v2569_v3, %s2289_s30  ;;  %v1301_v3 = vld [vmem:[%s2689_s9] sm:$0xff] }
 0x85b   :  { %v1927_v24 = vpack.c.bf16 %v1302_v23, %v1301_v3 }
 0x8d1   :  { %v1128_v15 = vpop.xlane.xlu0 %1127 }
 0x8d2   :  { %2030 = vrcp.f32 %v1128_v15  ;;  %v1549_v15 = vld [vmem:[%s2695_s15 + $0x10] sm:$0xff] }
 0x8d5   :  { %v1992_v7 = vpop.permute.xlu0 %1991 }
 0x8d6   :  { %v1994_v16 = vunpack.i.h.bf16 %v1992_v7  ;;  %v1993_v17 = vunpack.i.l.bf16 %v1992_v7  ;;  %v1943_v7 = vpack.c.bf16 %v1548_v14, %v1547_v13 }
 0x8d8   :  { %v1922_v19 = vpack.c.bf16 %v1994_v16, %v1993_v17  ;;  %v1550_v16 = vld [vmem:[%s2695_s15 + $0x18] sm:$0xff] }
 0x8d9   :  { %v1947_v17 = vpack.c.bf16 %v1550_v16, %v1549_v15 }
 0x8da   :  { %1923 = vmatpush3.bf16.msra.mxu1 %v1922_v19 }
 0x8db   :  { %1928 = vmatprep.subr.bf16.mxu1 %v1927_v24 }
 0x8dc   :  { %v2031_v21 = vpop.eup %2030 }
 0x8dd   :  { %v1132_v22 = vmul.f32 %v2031_v21, %v2027_v12  ;;  %1841 = vmatmul.mubr.msk.f32.vlgmr.msra.gmra.mrb[8].mxu1 %vm610_vm4, %v1131_v20 }
 0x8de   :  { %1930 = vmatpush3.bf16.msra.mxu1 %v1927_v24 }
 0x8df   :  { %1848 = vmatmul.mubr.msk.f32.vlgmr.msra.gmra.mrb[16].mxu0 %vm610_vm4, %v1132_v22  ;;  %1932 = vmatprep.subr.bf16.mxu1 %v1931_v27 }
 0x8e0   :  { %1938 = vmatpush3.bf16.msra.mxu0 %v1935_v55 }
 0x8e2   :  { %1934 = vmatpush3.bf16.msra.mxu1 %v1931_v27 }
 0x8e3   :  { %1944 = vmatprep.subr.bf16.mxu1 %v1943_v7 }
 0x9b0   :  { %v1208_v28 = vpop.f32.mrb[8].mxu1 }
 0x9b1   :  { %1293 = vrot.lane.b32.xlu1 %v1208_v28, %s2290_s18  ;;  %v1842_v29 = vpop.f32.mrb[9].mxu1 }
 0x9b2   :  { %v1287_v30 = vpop.f32.mrb[16].mxu0 }
 0x9b3   :  { %v1849_v31 = vpop.f32.mrb[17].mxu0 }
 0x9b5   :  { %1295 = vrot.lane.b32.xlu1 %v1287_v30, %s2290_s18 }
 0xa23   :  { %v1294_v32 = vpop.permute.xlu1 %1293 }
 0xa24   :  { %v1299_v33 = vsel %vm610_vm4, %v865_v57, %v1294_v32  ;;  %v1440_v57 = vld [vmem:[%s2693_s13 + $0x18] sm:$0xff] }
 0xa25   :  { %1858 = vmatprep.mubr.msk.f32.mxu1 %vm290_vm2, %v1299_v33  ;;  %v1939_v58 = vpack.c.bf16 %v1440_v57, %v1439_v56 }
 0xa27   :  { %v1296_v34 = vpop.permute.xlu1 %1295  ;;  %1940 = vmatprep.subr.bf16.mxu0 %v1939_v58 }
 0xa28   :  { %v1300_v35 = vsel %vm610_vm4, %v944_v59, %v1296_v34  ;;  %1942 = vmatpush3.bf16.msra.mxu0 %v1939_v58 }
 0xa29   :  { %1859 = vmatmul.mubr.msk.f32.vlgmr.msra.gmra.mrb[10].mxu1 %vm290_vm2, %v1300_v35 }
 0xa2a   :  { %1946 = vmatpush3.bf16.msra.mxu1 %v1943_v7 }
 0xa2b   :  { %1948 = vmatprep.subr.bf16.mxu1 %v1947_v17 }
 0xa2e   :  { %1950 = vmatpush3.bf16.msra.mxu1 %v1947_v17 }
 0xafc   :  { %v1860_v37 = vpop.f32.mrb[10].mxu1 }
 0xafd   :  { %v1390_v38 = vadd.f32 %v1860_v37, %v1684_v36  ;;  %v1384_v39 = vpop.f32.mrb[11].mxu1 }
 0xafe   :  { %v1385_v40 = vadd.f32 %v1684_v36, %v1384_v39 }
 0xaff   :  { %v1398_v41 = vsel %vm290_vm2, %v1390_v38, 0.0 }
 0xb00   :  { %1399 = vadd.xlane.f32.xlu1 %v1398_v41  ;;  %v1395_v42 = vsel %vm290_vm2, %v1385_v40, 0.0 }
 0xb01   :  { %1396 = vadd.xlane.f32.xlu0 %v1395_v42 }
 0xb8d   :  { %v1400_v43 = vpop.xlane.xlu1 %1399 }
 0xb8e   :  { %v1402_v44 = vmul.f32 0.03125, %v1400_v43  ;;  %v1397_v45 = vpop.xlane.xlu0 %1396 }
 0xb8f   :  { %v1401_v46 = vmul.f32 0.03125, %v1397_v45 }
 0xb90   :  { %v1404_v47 = vsub.f32 %v1390_v38, %v1402_v44 }
 0xb91   :  { %v1403_v48 = vsub.f32 %v1385_v40, %v1401_v46  ;;  %v1692_v40 = vld [vmem:[%s2696_s16] ss:$0 sm:$0xff] }
 0xb92   :  { %v1406_v51 = vmul.f32 %v1404_v47, %v1404_v47 }
 0xb93   :  { %v1405_v49 = vmul.f32 %v1403_v48, %v1403_v48 }
 0xb94   :  { %v1410_v52 = vsel %vm290_vm2, %v1406_v51, 0.0 }
 0xb95   :  { %v1407_v50 = vsel %vm290_vm2, %v1405_v49, 0.0 }
 0xb96   :  { %1408 = vadd.xlane.f32.xlu0 %v1407_v50 }
 0xb9a   :  { %1411 = vadd.xlane.f32.xlu0 %v1410_v52 }
 0xc23   :  { %v1409_v59 = vpop.xlane.xlu0 %1408 }
 0xc24   :  { %v1413_v60 = vmul.f32 0.03125, %v1409_v59 }
 0xc26   :  { %v1415_v61 = vadd.f32 1e-05, %v1413_v60 }
 0xc27   :  { %v1412_v63 = vpop.xlane.xlu0 %1411 }
 0xc28   :  { %2032 = vrsqrt.f32 %v1415_v61  ;;  %v1414_v0 = vmul.f32 0.03125, %v1412_v63 }
 0xc2a   :  { %v1416_v62 = vadd.f32 1e-05, %v1414_v0 }
 0xc2c   :  { %2034 = vrsqrt.f32 %v1416_v62 }
 0xc32   :  { %v2033_v1 = vpop.eup %2032 }
 0xc33   :  { %v1419_v4 = vmul.f32 %v2033_v1, %v1403_v48 }
 0xc35   :  { %v1427_v6 = vmul.f32 %v1687_v2, %v1419_v4 }
 0xc36   :  { %v2035_v8 = vpop.eup %2034 }
 0xc37   :  { %v1420_v9 = vmul.f32 %v2035_v8, %v1404_v47  ;;  %v1435_v10 = vadd.f32 %v1688_v5, %v1427_v6 }
 0xc39   :  { %v1428_v11 = vmul.f32 %v1687_v2, %v1420_v9  ;;  %1869 = vmatprep.mubr.msk.f32.mxu0 %vm290_vm2, %v1435_v10 }
 0xc3b   :  { %v1436_v12 = vadd.f32 %v1688_v5, %v1428_v11 }
 0xc3d   :  { %1870 = vmatmul.mubr.msk.f32.vlgmr.msra.gmra.mrb[18].mxu0 %vm290_vm2, %v1436_v12 }
 0xd10   :  { %v1871_v19 = vpop.f32.mrb[18].mxu0 }
 0xd11   :  { %v1526_v20 = vadd.f32 %v1871_v19, %v1689_v18  ;;  %v1520_v21 = vpop.f32.mrb[19].mxu0 }
 0xd12   :  { %v1521_v22 = vadd.f32 %v1689_v18, %v1520_v21 }
 0xd13   :  { %v1532_v3 = vmul.f32 0.044715, %v1526_v20  ;;  %v1530_v37 = vmul.f32 0.5, %v1526_v20 }
 0xd14   :  { %v1531_v23 = vmul.f32 0.044715, %v1521_v22  ;;  %v1529_v35 = vmul.f32 0.5, %v1521_v22 }
 0xd15   :  { %v1534_v24 = vmul.f32 %v1532_v3, %v1526_v20 }
 0xd16   :  { %v1533_v25 = vmul.f32 %v1531_v23, %v1521_v22 }
 0xd17   :  { %v1536_v26 = vmul.f32 %v1534_v24, %v1526_v20 }
 0xd18   :  { %v1535_v27 = vmul.f32 %v1533_v25, %v1521_v22 }
 0xd19   :  { %v1538_v28 = vadd.f32 %v1536_v26, %v1526_v20 }
 0xd1a   :  { %v1537_v29 = vadd.f32 %v1535_v27, %v1521_v22 }
 0xd1b   :  { %v1540_v30 = vmul.f32 0.7978846, %v1538_v28 }
 0xd1c   :  { %v1539_v31 = vmul.f32 0.7978846, %v1537_v29 }
 0xd1d   :  { %2036 = vtanh.f32 %v1540_v30 }
 0xd1e   :  { %2038 = vtanh.f32 %v1539_v31 }
 0xd27   :  { %v2037_v32 = vpop.eup %2036 }
 0xd28   :  { %v2039_v33 = vpop.eup %2038  ;;  %v1544_v34 = vadd.f32 1.0, %v2037_v32 }
 0xd29   :  { %v1543_v36 = vadd.f32 1.0, %v2039_v33 }
 0xd2a   :  { %v1546_v39 = vmul.f32 %v1544_v34, %v1530_v37 }
 0xd2b   :  { %v1545_v38 = vmul.f32 %v1543_v36, %v1529_v35 }
 0xd2d   :  { %1880 = vmatprep.mubr.msk.f32.mxu1 %vm290_vm2, %v1545_v38 }
 0xd2e   :  { %1881 = vmatmul.mubr.msk.f32.vlgmr.msra.gmra.mrb[12].mxu1 %vm290_vm2, %v1546_v39 }
 0xe01   :  { %v1882_v41 = vpop.f32.mrb[12].mxu1 }
 0xe02   :  { %v1636_v42 = vadd.f32 %v1882_v41, %v1692_v40  ;;  %v1630_v43 = vpop.f32.mrb[13].mxu1 }
 0xe03   :  { %v1631_v44 = vadd.f32 %v1692_v40, %v1630_v43 }
 0xe04   :  { %1640 = vst.msk [vmem:[%s2697_s17 + $0x8] sm:$0xff] %vm186_vm1, %v1636_v42 }
 0xe05   :  { %1639 = vst.msk [vmem:[%s2697_s17] sm:$0xff] %vm186_vm1, %v1631_v44 }
 0xe06   :  { %1645 = vsyncpa [#allocation3], 1 }
 0xe07   :  { %1646 = vsyncpa [#allocation5], 1 }
 0xe08   :  { %1647 = vsyncpa [#allocation8], 1 }
 0xe09   :  { %1648 = vsyncpa [#allocation11], 1 }
 0xe0a   :  { %1649 = vsyncpa [#allocation14], 1 }
 0xe0b   :  { %1650 = vsyncpa [#allocation17], 1 }

</bundles_post_ra>
